<compile_context>
chip_gen: v5e
topology: v5e:2x2
jax: 0.10.0
libtpu: 0.0.40
codegen_flags: <defaults>
</compile_context>

<pallas_src>
import jax
import jax.numpy as jnp
from jax import lax
from jax.experimental import pallas as pl
from jax.experimental.pallas import tpu as pltpu

BN_EPS = 1e-5
_MIB = 1024 * 1024


def _round_up(v, m):
    return (v + m - 1) // m * m


# ---------------------------------------------------------------------------
# Kernel 1: feature projections P1 = x @ W1a, P2 = x @ W2a (bf16 outputs).
# ---------------------------------------------------------------------------
def _proj_kernel(x_ref, w1a_ref, w2a_ref, p1_ref, p2_ref):
    x = x_ref[...]
    p1_ref[...] = jnp.dot(x, w1a_ref[...],
                          preferred_element_type=jnp.float32).astype(jnp.bfloat16)
    p2_ref[...] = jnp.dot(x, w2a_ref[...],
                          preferred_element_type=jnp.float32).astype(jnp.bfloat16)


# ---------------------------------------------------------------------------
# Kernel 2: tiled directed aggregation + both MLPs + masked partial BN stats.
# ---------------------------------------------------------------------------
def _make_agg_mlp_kernel(n_valid, resident_p):
    def kernel(*args):
        if resident_p:
            (a_ref, at_ref, p1_ref, p2_ref,
             b1a_ref, w1b_ref, b1b_ref, b2a_ref, w2b_ref, b2b_ref,
             pre_ref, sum_ref, sq_ref, acc_b_ref) = args
        else:
            (a_ref, at_ref, p1k_ref, p2k_ref, p1i_ref, p2i_ref,
             b1a_ref, w1b_ref, b1b_ref, b2a_ref, w2b_ref, b2b_ref,
             pre_ref, sum_ref, sq_ref, acc_b_ref) = args

        i = pl.program_id(0)
        k = pl.program_id(1)
        tm, tk = a_ref.shape
        p_out = pre_ref.shape[1]

        @pl.when(k == 0)
        def _():
            pre_ref[...] = jnp.zeros_like(pre_ref)
            acc_b_ref[...] = jnp.zeros_like(acc_b_ref)

        if resident_p:
            k0 = pl.multiple_of(k * tk, 128)
            p1k = p1_ref[pl.ds(k0, tk), :]
            p2k = p2_ref[pl.ds(k0, tk), :]
        else:
            p1k = p1k_ref[...]
            p2k = p2k_ref[...]

        # Forward aggregation accumulates directly into the (k-resident) output
        # block; backward aggregation uses the single f32 VMEM scratch.
        pre_ref[...] += jnp.dot(a_ref[...], p1k, preferred_element_type=jnp.float32)
        acc_b_ref[...] += jnp.dot(at_ref[...], p2k, preferred_element_type=jnp.float32)

        @pl.when(k == pl.num_programs(1) - 1)
        def _():
            if resident_p:
                i0 = pl.multiple_of(i * tm, 128)
                p1i = p1_ref[pl.ds(i0, tm), :].astype(jnp.float32)
                p2i = p2_ref[pl.ds(i0, tm), :].astype(jnp.float32)
            else:
                p1i = p1i_ref[...].astype(jnp.float32)
                p2i = p2i_ref[...].astype(jnp.float32)

            # Reassociated GIN + first Linear: (x + A@x) @ W = x@W + A@(x@W).
            z1 = jnp.maximum(pre_ref[...] + p1i + b1a_ref[...], 0.0)
            o1 = jnp.maximum(
                jnp.dot(z1, w1b_ref[...], preferred_element_type=jnp.float32)
                + b1b_ref[...], 0.0)
            z2 = jnp.maximum(acc_b_ref[...] + p2i + b2a_ref[...], 0.0)
            o2 = jnp.maximum(
                jnp.dot(z2, w2b_ref[...], preferred_element_type=jnp.float32)
                + b2b_ref[...], 0.0)

            pre = (o1 + o2) * 0.5
            # Zero padded rows so the BN partial statistics (and any downstream
            # full-array reductions) only see the N valid rows.
            rows = i * tm + lax.broadcasted_iota(jnp.int32, (tm, 1), 0)
            pre = pre * (rows < n_valid).astype(jnp.float32)
            pre_ref[...] = pre

            # Per-row-tile partial sum / sum-of-squares, reduced into an
            # (8, p_out) sublane-grouped block via static 8-row slices
            # (layout-trivial, robust lowering); XLA finishes the reduction.
            s8 = jnp.zeros((8, p_out), jnp.float32)
            q8 = jnp.zeros((8, p_out), jnp.float32)
            for j in range(tm // 8):
                blk = pre_ref[j * 8:(j + 1) * 8, :]
                s8 = s8 + blk
                q8 = q8 + blk * blk
            sum_ref[...] = s8
            sq_ref[...] = q8

    return kernel


# ---------------------------------------------------------------------------
# Kernel 3: apply BatchNorm affine (scale/shift precomputed from batch stats).
# ---------------------------------------------------------------------------
def _bn_apply_kernel(pre_ref, scale_ref, shift_ref, out_ref):
    out_ref[...] = pre_ref[...] * scale_ref[...] + shift_ref[...]


# ---------------------------------------------------------------------------
# Wrapper
# ---------------------------------------------------------------------------
def directed_gin_conv(x, edge_index, params, *, tm=512, tk=512):
    """x: (N, in_dim) f32, edge_index: (2, E) int32, params: dict of f32 arrays."""
    n, in_dim = x.shape
    out_dim = params["w1b"].shape[1]

    p_out = _round_up(out_dim, 128)          # lane-dense features
    d_in = _round_up(in_dim, 128)
    n128 = _round_up(n, 128)

    # Clamp tiles to the (128-aligned) row count; keep one tile a divisor of the
    # other so n_pad only over-pads by < max(tm, tk) rows (no lcm blow-up).
    tm = min(tm, n128)
    tk = min(tk, n128)
    if max(tm, tk) % min(tm, tk) != 0:
        tk = tm
    n_pad = _round_up(n, max(tm, tk))
    n_i = n_pad // tm
    n_k = n_pad // tk

    # Keep P1/P2 fully VMEM-resident in kernel 2 when they fit comfortably
    # (<=16 MiB bf16 => <=32 MiB even if double-buffered); removes the n_i x
    # HBM re-read of the projection bands while staying inside v7x's 64 MiB.
    resident_p = (2 * n_pad * p_out * 2) <= 16 * _MIB
    vmem_limit_k2 = (48 if resident_p else 32) * _MIB

    # Dense adjacency built directly in bf16 (no f32 N^2 intermediate).  A and
    # A^T are scattered separately from the edge list so both directions use
    # MXU-native row-major matmuls (no transposed contraction in-kernel).
    # TODO(synk): for very large / sparse graphs replace the dense N^2 adjacency
    # with a scalar-prefetch segment-sum kernel and a single-pass scheme that
    # reuses each adjacency block for both directions.
    ones = jnp.ones((edge_index.shape[1],), jnp.bfloat16)
    a_fwd = jnp.zeros((n_pad, n_pad), jnp.bfloat16).at[
        edge_index[1], edge_index[0]].add(ones)            # A[dst, src]
    a_bwd = jnp.zeros((n_pad, n_pad), jnp.bfloat16).at[
        edge_index[0], edge_index[1]].add(ones)            # A^T[src, dst]

    x_pad = jnp.pad(x, ((0, n_pad - n), (0, d_in - in_dim)))

    def pad_mat(w, r, c):
        return jnp.pad(w, ((0, r - w.shape[0]), (0, c - w.shape[1])))

    def pad_vec(v, c):
        return jnp.pad(v.reshape(1, -1), ((0, 0), (0, c - v.shape[0])))

    w1a = pad_mat(params["w1a"], d_in, p_out)
    w2a = pad_mat(params["w2a"], d_in, p_out)
    w1b = pad_mat(params["w1b"], p_out, p_out)
    w2b = pad_mat(params["w2b"], p_out, p_out)
    b1a = pad_vec(params["b1a"], p_out)
    b1b = pad_vec(params["b1b"], p_out)
    b2a = pad_vec(params["b2a"], p_out)
    b2b = pad_vec(params["b2b"], p_out)
    gamma = pad_vec(params["gamma"], p_out)
    beta = pad_vec(params["beta"], p_out)

    # ---- kernel 1: projections ---------------------------------------------
    p1, p2 = pl.pallas_call(
        _proj_kernel,
        out_shape=(jax.ShapeDtypeStruct((n_pad, p_out), jnp.bfloat16),
                   jax.ShapeDtypeStruct((n_pad, p_out), jnp.bfloat16)),
        grid_spec=pltpu.PrefetchScalarGridSpec(
            num_scalar_prefetch=0,
            grid=(n_i,),
            in_specs=[pl.BlockSpec((tm, d_in), lambda i: (i, 0)),
                      pl.BlockSpec((d_in, p_out), lambda i: (0, 0)),
                      pl.BlockSpec((d_in, p_out), lambda i: (0, 0))],
            out_specs=[pl.BlockSpec((tm, p_out), lambda i: (i, 0)),
                       pl.BlockSpec((tm, p_out), lambda i: (i, 0))]),
        compiler_params=pltpu.CompilerParams(
            dimension_semantics=("parallel",),
            vmem_limit_bytes=32 * _MIB),
    )(x_pad, w1a, w2a)

    # ---- kernel 2: tiled aggregation + MLPs + partial BN stats --------------
    if resident_p:
        p_specs = [pl.BlockSpec((n_pad, p_out), lambda i, k: (0, 0)),   # P1 resident
                   pl.BlockSpec((n_pad, p_out), lambda i, k: (0, 0))]   # P2 resident
        p_args = (p1, p2)
    else:
        p_specs = [pl.BlockSpec((tk, p_out), lambda i, k: (k, 0)),      # P1[k]
                   pl.BlockSpec((tk, p_out), lambda i, k: (k, 0)),      # P2[k]
                   pl.BlockSpec((tm, p_out), lambda i, k: (i, 0)),      # P1[i]
                   pl.BlockSpec((tm, p_out), lambda i, k: (i, 0))]      # P2[i]
        p_args = (p1, p2, p1, p2)

    pre, psum, psq = pl.pallas_call(
        _make_agg_mlp_kernel(n, resident_p),
        out_shape=(jax.ShapeDtypeStruct((n_pad, p_out), jnp.float32),
                   jax.ShapeDtypeStruct((n_i * 8, p_out), jnp.float32),
                   jax.ShapeDtypeStruct((n_i * 8, p_out), jnp.float32)),
        grid_spec=pltpu.PrefetchScalarGridSpec(
            num_scalar_prefetch=0,
            grid=(n_i, n_k),
            in_specs=[pl.BlockSpec((tm, tk), lambda i, k: (i, k)),        # A block
                      pl.BlockSpec((tm, tk), lambda i, k: (i, k)),        # A^T block
                      *p_specs,
                      pl.BlockSpec((1, p_out), lambda i, k: (0, 0)),      # b1a
                      pl.BlockSpec((p_out, p_out), lambda i, k: (0, 0)),  # w1b
                      pl.BlockSpec((1, p_out), lambda i, k: (0, 0)),      # b1b
                      pl.BlockSpec((1, p_out), lambda i, k: (0, 0)),      # b2a
                      pl.BlockSpec((p_out, p_out), lambda i, k: (0, 0)),  # w2b
                      pl.BlockSpec((1, p_out), lambda i, k: (0, 0))],     # b2b
            out_specs=[pl.BlockSpec((tm, p_out), lambda i, k: (i, 0)),    # pre
                       pl.BlockSpec((8, p_out), lambda i, k: (i, 0)),     # partial sum
                       pl.BlockSpec((8, p_out), lambda i, k: (i, 0))],    # partial sq
            scratch_shapes=[pltpu.VMEM((tm, p_out), jnp.float32)]),
        compiler_params=pltpu.CompilerParams(
            dimension_semantics=("parallel", "arbitrary"),
            vmem_limit_bytes=vmem_limit_k2),
    )(a_fwd, a_bwd, *p_args, b1a, w1b, b1b, b2a, w2b, b2b)

    # ---- XLA glue: finalize BN batch statistics from tile partials ----------
    total = jnp.sum(psum, axis=0, keepdims=True)            # (1, p_out)
    total_sq = jnp.sum(psq, axis=0, keepdims=True)
    mean = total / n
    var = jnp.maximum(total_sq / n - mean * mean, 0.0)       # biased variance
    inv_std = lax.rsqrt(var + BN_EPS)
    scale = gamma * inv_std
    shift = beta - mean * scale

    # ---- kernel 3: apply BN affine (lane-dense row tiles) --------------------
    y = pl.pallas_call(
        _bn_apply_kernel,
        out_shape=jax.ShapeDtypeStruct((n_pad, p_out), jnp.float32),
        grid_spec=pltpu.PrefetchScalarGridSpec(
            num_scalar_prefetch=0,
            grid=(n_i,),
            in_specs=[pl.BlockSpec((tm, p_out), lambda i: (i, 0)),
                      pl.BlockSpec((1, p_out), lambda i: (0, 0)),
                      pl.BlockSpec((1, p_out), lambda i: (0, 0))],
            out_specs=pl.BlockSpec((tm, p_out), lambda i: (i, 0))),
        compiler_params=pltpu.CompilerParams(
            dimension_semantics=("parallel",),
            vmem_limit_bytes=32 * _MIB),
    )(pre, scale, shift)

    return y[:n, :out_dim]


def init_params(key, in_dim, out_dim):
    ks = jax.random.split(key, 10)
    s_in = 1.0 / jnp.sqrt(in_dim)
    s_out = 1.0 / jnp.sqrt(out_dim)
    return {
        # Linear weights stored as (in, out) so kernels do x @ W + b.
        "w1a": jax.random.uniform(ks[0], (in_dim, out_dim), jnp.float32, -s_in, s_in),
        "b1a": jax.random.uniform(ks[1], (out_dim,), jnp.float32, -s_in, s_in),
        "w1b": jax.random.uniform(ks[2], (out_dim, out_dim), jnp.float32, -s_out, s_out),
        "b1b": jax.random.uniform(ks[3], (out_dim,), jnp.float32, -s_out, s_out),
        "w2a": jax.random.uniform(ks[4], (in_dim, out_dim), jnp.float32, -s_in, s_in),
        "b2a": jax.random.uniform(ks[5], (out_dim,), jnp.float32, -s_in, s_in),
        "w2b": jax.random.uniform(ks[6], (out_dim, out_dim), jnp.float32, -s_out, s_out),
        "b2b": jax.random.uniform(ks[7], (out_dim,), jnp.float32, -s_out, s_out),
        "gamma": jnp.ones((out_dim,), jnp.float32),
        "beta": jnp.zeros((out_dim,), jnp.float32),
    }


def _reference(x, edge_index, params):
    """Pure-JAX reference with matching numerics (bf16 aggregation operands,
    f32 accumulation; HIGHEST precision on f32 matmuls) so the tolerance can
    stay tight."""
    n = x.shape[0]
    hp = lax.Precision.HIGHEST
    a = jnp.zeros((n, n), jnp.float32).at[edge_index[1], edge_index[0]].add(1.0)
    a16 = a.astype(jnp.bfloat16)

    p1 = jnp.dot(x, params["w1a"], precision=hp).astype(jnp.bfloat16)
    p2 = jnp.dot(x, params["w2a"], precision=hp).astype(jnp.bfloat16)
    agg1 = jnp.dot(a16, p1, preferred_element_type=jnp.float32)
    agg2 = jnp.dot(a16.T, p2, preferred_element_type=jnp.float32)

    z1 = jnp.maximum(p1.astype(jnp.float32) + agg1 + params["b1a"], 0.0)
    o1 = jnp.maximum(jnp.dot(z1, params["w1b"], precision=hp) + params["b1b"], 0.0)
    z2 = jnp.maximum(p2.astype(jnp.float32) + agg2 + params["b2a"], 0.0)
    o2 = jnp.maximum(jnp.dot(z2, params["w2b"], precision=hp) + params["b2b"], 0.0)

    out = (o1 + o2) * 0.5
    mean = out.mean(axis=0, keepdims=True)
    var = ((out - mean) ** 2).mean(axis=0, keepdims=True)   # biased
    return (out - mean) * lax.rsqrt(var + BN_EPS) * params["gamma"] + params["beta"]


if __name__ == "__main__":
    key = jax.random.PRNGKey(0)
    k_x, k_src, k_dst, k_p = jax.random.split(key, 4)

    N, E, IN_DIM, OUT_DIM = 8, 12, 16, 32
    x = jax.random.normal(k_x, (N, IN_DIM), jnp.float32)
    edge_index = jnp.stack([
        jax.random.randint(k_src, (E,), 0, N, jnp.int32),
        jax.random.randint(k_dst, (E,), 0, N, jnp.int32),
    ], axis=0)
    params = init_params(k_p, IN_DIM, OUT_DIM)

    out = jax.jit(directed_gin_conv)(x, edge_index, params)
    out = jax.block_until_ready(out)

    assert out.shape == (N, OUT_DIM)
    ref = _reference(x, edge_index, params)
    err = float(jnp.max(jnp.abs(out - ref)))
    assert jnp.allclose(out, ref, atol=1e-2, rtol=1e-2), (
        f"mismatch vs reference, max abs err={err}")

    print("KERNEL_OK")
</pallas_src>

<mosaic_0001>
module attributes {stable_mosaic.version = 11 : i64} {
  func.func @_proj_kernel(%arg0: i32, %arg1: memref<128x128xf32, #tpu.memory_space<vmem>>, %arg2: memref<128x128xf32, #tpu.memory_space<vmem>>, %arg3: memref<128x128xf32, #tpu.memory_space<vmem>>, %arg4: memref<128x128xbf16, #tpu.memory_space<vmem>>, %arg5: memref<128x128xbf16, #tpu.memory_space<vmem>>) attributes {dimension_semantics = [#tpu.dimension_semantics<parallel>], iteration_bounds = array<i64: 1>, scalar_prefetch = 0 : i64, scratch_operands = 0 : i64, tpu.core_type = #tpu.core_type<tc>, window_params = [{transform_indices = @transform_0, window_bounds = array<i64: 128, 128>}, {pipeline_mode = #tpu.pipeline_mode<synchronous>, transform_indices = @transform_1, window_bounds = array<i64: 128, 128>}, {pipeline_mode = #tpu.pipeline_mode<synchronous>, transform_indices = @transform_2, window_bounds = array<i64: 128, 128>}, {transform_indices = @transform_3, window_bounds = array<i64: 128, 128>}, {transform_indices = @transform_4, window_bounds = array<i64: 128, 128>}]} {
    %c0 = arith.constant 0 : index
    %c0_0 = arith.constant 0 : index
    %0 = vector.load %arg1[%c0, %c0_0] : memref<128x128xf32, #tpu.memory_space<vmem>>, vector<128x128xf32>
    %c0_1 = arith.constant 0 : index
    %c0_2 = arith.constant 0 : index
    %1 = vector.load %arg2[%c0_1, %c0_2] : memref<128x128xf32, #tpu.memory_space<vmem>>, vector<128x128xf32>
    %cst = arith.constant dense<0.000000e+00> : vector<128x128xf32>
    %2 = tpu.matmul %0, %1, %cst {dimension_numbers = #tpu.dot_dimension_numbers<[1], [0], [0], [1], [0, 0, 1, 1], [], []>} : vector<128x128xf32>, vector<128x128xf32>, vector<128x128xf32> -> vector<128x128xf32>
    %3 = arith.truncf %2 : vector<128x128xf32> to vector<128x128xbf16>
    %c0_3 = arith.constant 0 : index
    %c0_4 = arith.constant 0 : index
    %4 = vector.load %arg4[%c0_3, %c0_4] : memref<128x128xbf16, #tpu.memory_space<vmem>>, vector<128x128xbf16>
    tpu.vector_store %arg4[%c0_3, %c0_4], %3 {strides = array<i32>} : memref<128x128xbf16, #tpu.memory_space<vmem>>, vector<128x128xbf16>,
    %c0_5 = arith.constant 0 : index
    %c0_6 = arith.constant 0 : index
    %5 = vector.load %arg3[%c0_5, %c0_6] : memref<128x128xf32, #tpu.memory_space<vmem>>, vector<128x128xf32>
    %cst_7 = arith.constant dense<0.000000e+00> : vector<128x128xf32>
    %6 = tpu.matmul %0, %5, %cst_7 {dimension_numbers = #tpu.dot_dimension_numbers<[1], [0], [0], [1], [0, 0, 1, 1], [], []>} : vector<128x128xf32>, vector<128x128xf32>, vector<128x128xf32> -> vector<128x128xf32>
    %7 = arith.truncf %6 : vector<128x128xf32> to vector<128x128xbf16>
    %c0_8 = arith.constant 0 : index
    %c0_9 = arith.constant 0 : index
    %8 = vector.load %arg5[%c0_8, %c0_9] : memref<128x128xbf16, #tpu.memory_space<vmem>>, vector<128x128xbf16>
    tpu.vector_store %arg5[%c0_8, %c0_9], %7 {strides = array<i32>} : memref<128x128xbf16, #tpu.memory_space<vmem>>, vector<128x128xbf16>,
    return
  }
  func.func @transform_0(%arg0: i32) -> (i32, i32) {
    %c0_i32 = arith.constant 0 : i32
    %c0_i32_0 = arith.constant 0 : i32
    return %arg0, %c0_i32 : i32, i32
  }
  func.func @transform_1(%arg0: i32) -> (i32, i32) {
    %c0_i32 = arith.constant 0 : i32
    %c0_i32_0 = arith.constant 0 : i32
    %c0_i32_1 = arith.constant 0 : i32
    return %c0_i32, %c0_i32_0 : i32, i32
  }
  func.func @transform_2(%arg0: i32) -> (i32, i32) {
    %c0_i32 = arith.constant 0 : i32
    %c0_i32_0 = arith.constant 0 : i32
    %c0_i32_1 = arith.constant 0 : i32
    return %c0_i32, %c0_i32_0 : i32, i32
  }
  func.func @transform_3(%arg0: i32) -> (i32, i32) {
    %c0_i32 = arith.constant 0 : i32
    %c0_i32_0 = arith.constant 0 : i32
    return %arg0, %c0_i32 : i32, i32
  }
  func.func @transform_4(%arg0: i32) -> (i32, i32) {
    %c0_i32 = arith.constant 0 : i32
    %c0_i32_0 = arith.constant 0 : i32
    return %arg0, %c0_i32 : i32, i32
  }
}

module attributes {stable_mosaic.version = 11 : i64} {
  func.func @kernel(%arg0: i32, %arg1: i32, %arg2: memref<128x128xbf16, #tpu.memory_space<vmem>>, %arg3: memref<128x128xbf16, #tpu.memory_space<vmem>>, %arg4: memref<128x128xbf16, #tpu.memory_space<vmem>>, %arg5: memref<128x128xbf16, #tpu.memory_space<vmem>>, %arg6: memref<1x128xf32, #tpu.memory_space<vmem>>, %arg7: memref<128x128xf32, #tpu.memory_space<vmem>>, %arg8: memref<1x128xf32, #tpu.memory_space<vmem>>, %arg9: memref<1x128xf32, #tpu.memory_space<vmem>>, %arg10: memref<128x128xf32, #tpu.memory_space<vmem>>, %arg11: memref<1x128xf32, #tpu.memory_space<vmem>>, %arg12: memref<128x128xf32, #tpu.memory_space<vmem>>, %arg13: memref<8x128xf32, #tpu.memory_space<vmem>>, %arg14: memref<8x128xf32, #tpu.memory_space<vmem>>, %arg15: memref<128x128xf32, #tpu.memory_space<vmem>>) attributes {dimension_semantics = [#tpu.dimension_semantics<parallel>, #tpu.dimension_semantics<arbitrary>], iteration_bounds = array<i64: 1, 1>, scalar_prefetch = 0 : i64, scratch_operands = 1 : i64, tpu.core_type = #tpu.core_type<tc>, window_params = [{transform_indices = @transform_0, window_bounds = array<i64: 128, 128>}, {transform_indices = @transform_1, window_bounds = array<i64: 128, 128>}, {pipeline_mode = #tpu.pipeline_mode<synchronous>, transform_indices = @transform_2, window_bounds = array<i64: 128, 128>}, {pipeline_mode = #tpu.pipeline_mode<synchronous>, transform_indices = @transform_3, window_bounds = array<i64: 128, 128>}, {pipeline_mode = #tpu.pipeline_mode<synchronous>, transform_indices = @transform_4, window_bounds = array<i64: 1, 128>}, {pipeline_mode = #tpu.pipeline_mode<synchronous>, transform_indices = @transform_5, window_bounds = array<i64: 128, 128>}, {pipeline_mode = #tpu.pipeline_mode<synchronous>, transform_indices = @transform_6, window_bounds = array<i64: 1, 128>}, {pipeline_mode = #tpu.pipeline_mode<synchronous>, transform_indices = @transform_7, window_bounds = array<i64: 1, 128>}, {pipeline_mode = #tpu.pipeline_mode<synchronous>, transform_indices = @transform_8, window_bounds = array<i64: 128, 128>}, {pipeline_mode = #tpu.pipeline_mode<synchronous>, transform_indices = @transform_9, window_bounds = array<i64: 1, 128>}, {transform_indices = @transform_10, window_bounds = array<i64: 128, 128>}, {transform_indices = @transform_11, window_bounds = array<i64: 8, 128>}, {transform_indices = @transform_12, window_bounds = array<i64: 8, 128>}]} {
    %c0_i32 = arith.constant 0 : i32
    %0 = arith.cmpi eq, %arg1, %c0_i32 : i32
    %1 = arith.extui %0 : i1 to i32
    %c0_i32_0 = arith.constant 0 : i32
    %2 = arith.cmpi ne, %1, %c0_i32_0 : i32
    scf.if %2 {
      %cst_17 = arith.constant 0.000000e+00 : f32
      %22 = vector.broadcast %cst_17 : f32 to vector<128x128xf32>
      %c0_18 = arith.constant 0 : index
      %c0_19 = arith.constant 0 : index
      %23 = vector.load %arg12[%c0_18, %c0_19] : memref<128x128xf32, #tpu.memory_space<vmem>>, vector<128x128xf32>
      tpu.vector_store %arg12[%c0_18, %c0_19], %22 {strides = array<i32>} : memref<128x128xf32, #tpu.memory_space<vmem>>, vector<128x128xf32>,
      %cst_20 = arith.constant 0.000000e+00 : f32
      %24 = vector.broadcast %cst_20 : f32 to vector<128x128xf32>
      %c0_21 = arith.constant 0 : index
      %c0_22 = arith.constant 0 : index
      %25 = vector.load %arg15[%c0_21, %c0_22] : memref<128x128xf32, #tpu.memory_space<vmem>>, vector<128x128xf32>
      tpu.vector_store %arg15[%c0_21, %c0_22], %24 {strides = array<i32>} : memref<128x128xf32, #tpu.memory_space<vmem>>, vector<128x128xf32>,
    } else {
    }
    %c128_i32 = arith.constant 128 : i32
    %3 = arith.muli %arg1, %c128_i32 : i32
    %4 = tpu.assume_multiple %3, 128 : i32
    %5 = arith.index_cast %4 : i32 to index
    %c0 = arith.constant 0 : index
    %6 = vector.load %arg4[%5, %c0] : memref<128x128xbf16, #tpu.memory_space<vmem>>, vector<128x128xbf16>
    %7 = arith.index_cast %4 : i32 to index
    %c0_1 = arith.constant 0 : index
    %8 = vector.load %arg5[%7, %c0_1] : memref<128x128xbf16, #tpu.memory_space<vmem>>, vector<128x128xbf16>
    %c0_2 = arith.constant 0 : index
    %c0_3 = arith.constant 0 : index
    %9 = vector.load %arg12[%c0_2, %c0_3] : memref<128x128xf32, #tpu.memory_space<vmem>>, vector<128x128xf32>
    %c0_4 = arith.constant 0 : index
    %c0_5 = arith.constant 0 : index
    %10 = vector.load %arg2[%c0_4, %c0_5] : memref<128x128xbf16, #tpu.memory_space<vmem>>, vector<128x128xbf16>
    %cst = arith.constant dense<0.000000e+00> : vector<128x128xf32>
    %11 = tpu.matmul %10, %6, %cst {dimension_numbers = #tpu.dot_dimension_numbers<[1], [0], [0], [1], [0, 0, 1, 1], [], []>} : vector<128x128xbf16>, vector<128x128xbf16>, vector<128x128xf32> -> vector<128x128xf32>
    %12 = arith.addf %9, %11 : vector<128x128xf32>
    %c0_6 = arith.constant 0 : index
    %c0_7 = arith.constant 0 : index
    %13 = vector.load %arg12[%c0_6, %c0_7] : memref<128x128xf32, #tpu.memory_space<vmem>>, vector<128x128xf32>
    tpu.vector_store %arg12[%c0_6, %c0_7], %12 {strides = array<i32>} : memref<128x128xf32, #tpu.memory_space<vmem>>, vector<128x128xf32>,
    %c0_8 = arith.constant 0 : index
    %c0_9 = arith.constant 0 : index
    %14 = vector.load %arg15[%c0_8, %c0_9] : memref<128x128xf32, #tpu.memory_space<vmem>>, vector<128x128xf32>
    %c0_10 = arith.constant 0 : index
    %c0_11 = arith.constant 0 : index
    %15 = vector.load %arg3[%c0_10, %c0_11] : memref<128x128xbf16, #tpu.memory_space<vmem>>, vector<128x128xbf16>
    %cst_12 = arith.constant dense<0.000000e+00> : vector<128x128xf32>
    %16 = tpu.matmul %15, %8, %cst_12 {dimension_numbers = #tpu.dot_dimension_numbers<[1], [0], [0], [1], [0, 0, 1, 1], [], []>} : vector<128x128xbf16>, vector<128x128xbf16>, vector<128x128xf32> -> vector<128x128xf32>
    %17 = arith.addf %14, %16 : vector<128x128xf32>
    %c0_13 = arith.constant 0 : index
    %c0_14 = arith.constant 0 : index
    %18 = vector.load %arg15[%c0_13, %c0_14] : memref<128x128xf32, #tpu.memory_space<vmem>>, vector<128x128xf32>
    tpu.vector_store %arg15[%c0_13, %c0_14], %17 {strides = array<i32>} : memref<128x128xf32, #tpu.memory_space<vmem>>, vector<128x128xf32>,
    %c0_i32_15 = arith.constant 0 : i32
    %19 = arith.cmpi eq, %arg1, %c0_i32_15 : i32
    %20 = arith.extui %19 : i1 to i32
    %c0_i32_16 = arith.constant 0 : i32
    %21 = arith.cmpi ne, %20, %c0_i32_16 : i32
    scf.if %21 {
      %c128_i32_17 = arith.constant 128 : i32
      %22 = arith.muli %arg0, %c128_i32_17 : i32
      %23 = tpu.assume_multiple %22, 128 : i32
      %24 = arith.index_cast %23 : i32 to index
      %c0_18 = arith.constant 0 : index
      %25 = vector.load %arg4[%24, %c0_18] : memref<128x128xbf16, #tpu.memory_space<vmem>>, vector<128x128xbf16>
      %26 = arith.extf %25 : vector<128x128xbf16> to vector<128x128xf32>
      %27 = arith.index_cast %23 : i32 to index
      %c0_19 = arith.constant 0 : index
      %28 = vector.load %arg5[%27, %c0_19] : memref<128x128xbf16, #tpu.memory_space<vmem>>, vector<128x128xbf16>
      %29 = arith.extf %28 : vector<128x128xbf16> to vector<128x128xf32>
      %c0_20 = arith.constant 0 : index
      %c0_21 = arith.constant 0 : index
      %30 = vector.load %arg12[%c0_20, %c0_21] : memref<128x128xf32, #tpu.memory_space<vmem>>, vector<128x128xf32>
      %31 = arith.addf %30, %26 : vector<128x128xf32>
      %c0_22 = arith.constant 0 : index
      %c0_23 = arith.constant 0 : index
      %32 = vector.load %arg6[%c0_22, %c0_23] : memref<1x128xf32, #tpu.memory_space<vmem>>, vector<1x128xf32>
      %33 = vector.broadcast %32 : vector<1x128xf32> to vector<128x128xf32>
      %34 = arith.addf %31, %33 : vector<128x128xf32>
      %cst_24 = arith.constant 0.000000e+00 : f32
      %35 = vector.broadcast %cst_24 : f32 to vector<128x128xf32>
      %36 = arith.maximumf %34, %35 : vector<128x128xf32>
      %c0_25 = arith.constant 0 : index
      %c0_26 = arith.constant 0 : index
      %37 = vector.load %arg7[%c0_25, %c0_26] : memref<128x128xf32, #tpu.memory_space<vmem>>, vector<128x128xf32>
      %cst_27 = arith.constant dense<0.000000e+00> : vector<128x128xf32>
      %38 = tpu.matmul %36, %37, %cst_27 {dimension_numbers = #tpu.dot_dimension_numbers<[1], [0], [0], [1], [0, 0, 1, 1], [], []>} : vector<128x128xf32>, vector<128x128xf32>, vector<128x128xf32> -> vector<128x128xf32>
      %c0_28 = arith.constant 0 : index
      %c0_29 = arith.constant 0 : index
      %39 = vector.load %arg8[%c0_28, %c0_29] : memref<1x128xf32, #tpu.memory_space<vmem>>, vector<1x128xf32>
      %40 = vector.broadcast %39 : vector<1x128xf32> to vector<128x128xf32>
      %41 = arith.addf %38, %40 : vector<128x128xf32>
      %cst_30 = arith.constant 0.000000e+00 : f32
      %42 = vector.broadcast %cst_30 : f32 to vector<128x128xf32>
      %43 = arith.maximumf %41, %42 : vector<128x128xf32>
      %c0_31 = arith.constant 0 : index
      %c0_32 = arith.constant 0 : index
      %44 = vector.load %arg15[%c0_31, %c0_32] : memref<128x128xf32, #tpu.memory_space<vmem>>, vector<128x128xf32>
      %45 = arith.addf %44, %29 : vector<128x128xf32>
      %c0_33 = arith.constant 0 : index
      %c0_34 = arith.constant 0 : index
      %46 = vector.load %arg9[%c0_33, %c0_34] : memref<1x128xf32, #tpu.memory_space<vmem>>, vector<1x128xf32>
      %47 = vector.broadcast %46 : vector<1x128xf32> to vector<128x128xf32>
      %48 = arith.addf %45, %47 : vector<128x128xf32>
      %cst_35 = arith.constant 0.000000e+00 : f32
      %49 = vector.broadcast %cst_35 : f32 to vector<128x128xf32>
      %50 = arith.maximumf %48, %49 : vector<128x128xf32>
      %c0_36 = arith.constant 0 : index
      %c0_37 = arith.constant 0 : index
      %51 = vector.load %arg10[%c0_36, %c0_37] : memref<128x128xf32, #tpu.memory_space<vmem>>, vector<128x128xf32>
      %cst_38 = arith.constant dense<0.000000e+00> : vector<128x128xf32>
      %52 = tpu.matmul %50, %51, %cst_38 {dimension_numbers = #tpu.dot_dimension_numbers<[1], [0], [0], [1], [0, 0, 1, 1], [], []>} : vector<128x128xf32>, vector<128x128xf32>, vector<128x128xf32> -> vector<128x128xf32>
      %c0_39 = arith.constant 0 : index
      %c0_40 = arith.constant 0 : index
      %53 = vector.load %arg11[%c0_39, %c0_40] : memref<1x128xf32, #tpu.memory_space<vmem>>, vector<1x128xf32>
      %54 = vector.broadcast %53 : vector<1x128xf32> to vector<128x128xf32>
      %55 = arith.addf %52, %54 : vector<128x128xf32>
      %cst_41 = arith.constant 0.000000e+00 : f32
      %56 = vector.broadcast %cst_41 : f32 to vector<128x128xf32>
      %57 = arith.maximumf %55, %56 : vector<128x128xf32>
      %58 = arith.addf %43, %57 : vector<128x128xf32>
      %cst_42 = arith.constant 5.000000e-01 : f32
      %59 = vector.broadcast %cst_42 : f32 to vector<128x128xf32>
      %60 = arith.mulf %58, %59 : vector<128x128xf32>
      %c128_i32_43 = arith.constant 128 : i32
      %61 = arith.muli %arg0, %c128_i32_43 : i32
      %62 = tpu.iota {dimensions = array<i32: 0>} : vector<128x1xi32>
      %63 = vector.broadcast %61 : i32 to vector<128x1xi32>
      %64 = arith.addi %63, %62 : vector<128x1xi32>
      %c8_i32 = arith.constant 8 : i32
      %65 = vector.broadcast %c8_i32 : i32 to vector<128x1xi32>
      %66 = arith.cmpi slt, %64, %65 : vector<128x1xi32>
      %67 = arith.extui %66 : vector<128x1xi1> to vector<128x1xi32>
      %68 = arith.sitofp %67 : vector<128x1xi32> to vector<128x1xf32>
      %69 = vector.broadcast %68 : vector<128x1xf32> to vector<128x128xf32>
      %70 = arith.mulf %60, %69 : vector<128x128xf32>
      %c0_44 = arith.constant 0 : index
      %c0_45 = arith.constant 0 : index
      %71 = vector.load %arg12[%c0_44, %c0_45] : memref<128x128xf32, #tpu.memory_space<vmem>>, vector<128x128xf32>
      tpu.vector_store %arg12[%c0_44, %c0_45], %70 {strides = array<i32>} : memref<128x128xf32, #tpu.memory_space<vmem>>, vector<128x128xf32>,
      %cst_46 = arith.constant 0.000000e+00 : f32
      %72 = vector.broadcast %cst_46 : f32 to vector<8x128xf32>
      %cst_47 = arith.constant 0.000000e+00 : f32
      %73 = vector.broadcast %cst_47 : f32 to vector<8x128xf32>
      %c0_48 = arith.constant 0 : index
      %c0_49 = arith.constant 0 : index
      %74 = vector.load %arg12[%c0_48, %c0_49] : memref<128x128xf32, #tpu.memory_space<vmem>>, vector<8x128xf32>
      %75 = arith.addf %72, %74 : vector<8x128xf32>
      %76 = arith.mulf %74, %74 : vector<8x128xf32>
      %77 = arith.addf %73, %76 : vector<8x128xf32>
      %c8 = arith.constant 8 : index
      %c0_50 = arith.constant 0 : index
      %78 = vector.load %arg12[%c8, %c0_50] : memref<128x128xf32, #tpu.memory_space<vmem>>, vector<8x128xf32>
      %79 = arith.addf %75, %78 : vector<8x128xf32>
      %80 = arith.mulf %78, %78 : vector<8x128xf32>
      %81 = arith.addf %77, %80 : vector<8x128xf32>
      %c16 = arith.constant 16 : index
      %c0_51 = arith.constant 0 : index
      %82 = vector.load %arg12[%c16, %c0_51] : memref<128x128xf32, #tpu.memory_space<vmem>>, vector<8x128xf32>
      %83 = arith.addf %79, %82 : vector<8x128xf32>
      %84 = arith.mulf %82, %82 : vector<8x128xf32>
      %85 = arith.addf %81, %84 : vector<8x128xf32>
      %c24 = arith.constant 24 : index
      %c0_52 = arith.constant 0 : index
      %86 = vector.load %arg12[%c24, %c0_52] : memref<128x128xf32, #tpu.memory_space<vmem>>, vector<8x128xf32>
      %87 = arith.addf %83, %86 : vector<8x128xf32>
      %88 = arith.mulf %86, %86 : vector<8x128xf32>
      %89 = arith.addf %85, %88 : vector<8x128xf32>
      %c32 = arith.constant 32 : index
      %c0_53 = arith.constant 0 : index
      %90 = vector.load %arg12[%c32, %c0_53] : memref<128x128xf32, #tpu.memory_space<vmem>>, vector<8x128xf32>
      %91 = arith.addf %87, %90 : vector<8x128xf32>
      %92 = arith.mulf %90, %90 : vector<8x128xf32>
      %93 = arith.addf %89, %92 : vector<8x128xf32>
      %c40 = arith.constant 40 : index
      %c0_54 = arith.constant 0 : index
      %94 = vector.load %arg12[%c40, %c0_54] : memref<128x128xf32, #tpu.memory_space<vmem>>, vector<8x128xf32>
      %95 = arith.addf %91, %94 : vector<8x128xf32>
      %96 = arith.mulf %94, %94 : vector<8x128xf32>
      %97 = arith.addf %93, %96 : vector<8x128xf32>
      %c48 = arith.constant 48 : index
      %c0_55 = arith.constant 0 : index
      %98 = vector.load %arg12[%c48, %c0_55] : memref<128x128xf32, #tpu.memory_space<vmem>>, vector<8x128xf32>
      %99 = arith.addf %95, %98 : vector<8x128xf32>
      %100 = arith.mulf %98, %98 : vector<8x128xf32>
      %101 = arith.addf %97, %100 : vector<8x128xf32>
      %c56 = arith.constant 56 : index
      %c0_56 = arith.constant 0 : index
      %102 = vector.load %arg12[%c56, %c0_56] : memref<128x128xf32, #tpu.memory_space<vmem>>, vector<8x128xf32>
      %103 = arith.addf %99, %102 : vector<8x128xf32>
      %104 = arith.mulf %102, %102 : vector<8x128xf32>
      %105 = arith.addf %101, %104 : vector<8x128xf32>
      %c64 = arith.constant 64 : index
      %c0_57 = arith.constant 0 : index
      %106 = vector.load %arg12[%c64, %c0_57] : memref<128x128xf32, #tpu.memory_space<vmem>>, vector<8x128xf32>
      %107 = arith.addf %103, %106 : vector<8x128xf32>
      %108 = arith.mulf %106, %106 : vector<8x128xf32>
      %109 = arith.addf %105, %108 : vector<8x128xf32>
      %c72 = arith.constant 72 : index
      %c0_58 = arith.constant 0 : index
      %110 = vector.load %arg12[%c72, %c0_58] : memref<128x128xf32, #tpu.memory_space<vmem>>, vector<8x128xf32>
      %111 = arith.addf %107, %110 : vector<8x128xf32>
      %112 = arith.mulf %110, %110 : vector<8x128xf32>
      %113 = arith.addf %109, %112 : vector<8x128xf32>
      %c80 = arith.constant 80 : index
      %c0_59 = arith.constant 0 : index
      %114 = vector.load %arg12[%c80, %c0_59] : memref<128x128xf32, #tpu.memory_space<vmem>>, vector<8x128xf32>
      %115 = arith.addf %111, %114 : vector<8x128xf32>
      %116 = arith.mulf %114, %114 : vector<8x128xf32>
      %117 = arith.addf %113, %116 : vector<8x128xf32>
      %c88 = arith.constant 88 : index
      %c0_60 = arith.constant 0 : index
      %118 = vector.load %arg12[%c88, %c0_60] : memref<128x128xf32, #tpu.memory_space<vmem>>, vector<8x128xf32>
      %119 = arith.addf %115, %118 : vector<8x128xf32>
      %120 = arith.mulf %118, %118 : vector<8x128xf32>
      %121 = arith.addf %117, %120 : vector<8x128xf32>
      %c96 = arith.constant 96 : index
      %c0_61 = arith.constant 0 : index
      %122 = vector.load %arg12[%c96, %c0_61] : memref<128x128xf32, #tpu.memory_space<vmem>>, vector<8x128xf32>
      %123 = arith.addf %119, %122 : vector<8x128xf32>
      %124 = arith.mulf %122, %122 : vector<8x128xf32>
      %125 = arith.addf %121, %124 : vector<8x128xf32>
      %c104 = arith.constant 104 : index
      %c0_62 = arith.constant 0 : index
      %126 = vector.load %arg12[%c104, %c0_62] : memref<128x128xf32, #tpu.memory_space<vmem>>, vector<8x128xf32>
      %127 = arith.addf %123, %126 : vector<8x128xf32>
      %128 = arith.mulf %126, %126 : vector<8x128xf32>
      %129 = arith.addf %125, %128 : vector<8x128xf32>
      %c112 = arith.constant 112 : index
      %c0_63 = arith.constant 0 : index
      %130 = vector.load %arg12[%c112, %c0_63] : memref<128x128xf32, #tpu.memory_space<vmem>>, vector<8x128xf32>
      %131 = arith.addf %127, %130 : vector<8x128xf32>
      %132 = arith.mulf %130, %130 : vector<8x128xf32>
      %133 = arith.addf %129, %132 : vector<8x128xf32>
      %c120 = arith.constant 120 : index
      %c0_64 = arith.constant 0 : index
      %134 = vector.load %arg12[%c120, %c0_64] : memref<128x128xf32, #tpu.memory_space<vmem>>, vector<8x128xf32>
      %135 = arith.addf %131, %134 : vector<8x128xf32>
      %136 = arith.mulf %134, %134 : vector<8x128xf32>
      %137 = arith.addf %133, %136 : vector<8x128xf32>
      %c0_65 = arith.constant 0 : index
      %c0_66 = arith.constant 0 : index
      %138 = vector.load %arg13[%c0_65, %c0_66] : memref<8x128xf32, #tpu.memory_space<vmem>>, vector<8x128xf32>
      tpu.vector_store %arg13[%c0_65, %c0_66], %135 {strides = array<i32>} : memref<8x128xf32, #tpu.memory_space<vmem>>, vector<8x128xf32>,
      %c0_67 = arith.constant 0 : index
      %c0_68 = arith.constant 0 : index
      %139 = vector.load %arg14[%c0_67, %c0_68] : memref<8x128xf32, #tpu.memory_space<vmem>>, vector<8x128xf32>
      tpu.vector_store %arg14[%c0_67, %c0_68], %137 {strides = array<i32>} : memref<8x128xf32, #tpu.memory_space<vmem>>, vector<8x128xf32>,
    } else {
    }
    return
  }
  func.func @transform_0(%arg0: i32, %arg1: i32) -> (i32, i32) {
    %c0_i32 = arith.constant 0 : i32
    return %arg0, %arg1 : i32, i32
  }
  func.func @transform_1(%arg0: i32, %arg1: i32) -> (i32, i32) {
    %c0_i32 = arith.constant 0 : i32
    return %arg0, %arg1 : i32, i32
  }
  func.func @transform_2(%arg0: i32, %arg1: i32) -> (i32, i32) {
    %c0_i32 = arith.constant 0 : i32
    %c0_i32_0 = arith.constant 0 : i32
    %c0_i32_1 = arith.constant 0 : i32
    return %c0_i32, %c0_i32_0 : i32, i32
  }
  func.func @transform_3(%arg0: i32, %arg1: i32) -> (i32, i32) {
    %c0_i32 = arith.constant 0 : i32
    %c0_i32_0 = arith.constant 0 : i32
    %c0_i32_1 = arith.constant 0 : i32
    return %c0_i32, %c0_i32_0 : i32, i32
  }
  func.func @transform_4(%arg0: i32, %arg1: i32) -> (i32, i32) {
    %c0_i32 = arith.constant 0 : i32
    %c0_i32_0 = arith.constant 0 : i32
    %c0_i32_1 = arith.constant 0 : i32
    return %c0_i32, %c0_i32_0 : i32, i32
  }
  func.func @transform_5(%arg0: i32, %arg1: i32) -> (i32, i32) {
    %c0_i32 = arith.constant 0 : i32
    %c0_i32_0 = arith.constant 0 : i32
    %c0_i32_1 = arith.constant 0 : i32
    return %c0_i32, %c0_i32_0 : i32, i32
  }
  func.func @transform_6(%arg0: i32, %arg1: i32) -> (i32, i32) {
    %c0_i32 = arith.constant 0 : i32
    %c0_i32_0 = arith.constant 0 : i32
    %c0_i32_1 = arith.constant 0 : i32
    return %c0_i32, %c0_i32_0 : i32, i32
  }
  func.func @transform_7(%arg0: i32, %arg1: i32) -> (i32, i32) {
    %c0_i32 = arith.constant 0 : i32
    %c0_i32_0 = arith.constant 0 : i32
    %c0_i32_1 = arith.constant 0 : i32
    return %c0_i32, %c0_i32_0 : i32, i32
  }
  func.func @transform_8(%arg0: i32, %arg1: i32) -> (i32, i32) {
    %c0_i32 = arith.constant 0 : i32
    %c0_i32_0 = arith.constant 0 : i32
    %c0_i32_1 = arith.constant 0 : i32
    return %c0_i32, %c0_i32_0 : i32, i32
  }
  func.func @transform_9(%arg0: i32, %arg1: i32) -> (i32, i32) {
    %c0_i32 = arith.constant 0 : i32
    %c0_i32_0 = arith.constant 0 : i32
    %c0_i32_1 = arith.constant 0 : i32
    return %c0_i32, %c0_i32_0 : i32, i32
  }
  func.func @transform_10(%arg0: i32, %arg1: i32) -> (i32, i32) {
    %c0_i32 = arith.constant 0 : i32
    %c0_i32_0 = arith.constant 0 : i32
    return %arg0, %c0_i32 : i32, i32
  }
  func.func @transform_11(%arg0: i32, %arg1: i32) -> (i32, i32) {
    %c0_i32 = arith.constant 0 : i32
    %c0_i32_0 = arith.constant 0 : i32
    return %arg0, %c0_i32 : i32, i32
  }
  func.func @transform_12(%arg0: i32, %arg1: i32) -> (i32, i32) {
    %c0_i32 = arith.constant 0 : i32
    %c0_i32_0 = arith.constant 0 : i32
    return %arg0, %c0_i32 : i32, i32
  }
}

module attributes {stable_mosaic.version = 11 : i64} {
  func.func @_bn_apply_kernel(%arg0: i32, %arg1: memref<128x128xf32, #tpu.memory_space<vmem>>, %arg2: memref<1x128xf32, #tpu.memory_space<vmem>>, %arg3: memref<1x128xf32, #tpu.memory_space<vmem>>, %arg4: memref<128x128xf32, #tpu.memory_space<vmem>>) attributes {dimension_semantics = [#tpu.dimension_semantics<parallel>], iteration_bounds = array<i64: 1>, scalar_prefetch = 0 : i64, scratch_operands = 0 : i64, tpu.core_type = #tpu.core_type<tc>, window_params = [{transform_indices = @transform_0, window_bounds = array<i64: 128, 128>}, {pipeline_mode = #tpu.pipeline_mode<synchronous>, transform_indices = @transform_1, window_bounds = array<i64: 1, 128>}, {pipeline_mode = #tpu.pipeline_mode<synchronous>, transform_indices = @transform_2, window_bounds = array<i64: 1, 128>}, {transform_indices = @transform_3, window_bounds = array<i64: 128, 128>}]} {
    %c0 = arith.constant 0 : index
    %c0_0 = arith.constant 0 : index
    %0 = vector.load %arg1[%c0, %c0_0] : memref<128x128xf32, #tpu.memory_space<vmem>>, vector<128x128xf32>
    %c0_1 = arith.constant 0 : index
    %c0_2 = arith.constant 0 : index
    %1 = vector.load %arg2[%c0_1, %c0_2] : memref<1x128xf32, #tpu.memory_space<vmem>>, vector<1x128xf32>
    %2 = vector.broadcast %1 : vector<1x128xf32> to vector<128x128xf32>
    %3 = arith.mulf %0, %2 : vector<128x128xf32>
    %c0_3 = arith.constant 0 : index
    %c0_4 = arith.constant 0 : index
    %4 = vector.load %arg3[%c0_3, %c0_4] : memref<1x128xf32, #tpu.memory_space<vmem>>, vector<1x128xf32>
    %5 = vector.broadcast %4 : vector<1x128xf32> to vector<128x128xf32>
    %6 = arith.addf %3, %5 : vector<128x128xf32>
    %c0_5 = arith.constant 0 : index
    %c0_6 = arith.constant 0 : index
    %7 = vector.load %arg4[%c0_5, %c0_6] : memref<128x128xf32, #tpu.memory_space<vmem>>, vector<128x128xf32>
    tpu.vector_store %arg4[%c0_5, %c0_6], %6 {strides = array<i32>} : memref<128x128xf32, #tpu.memory_space<vmem>>, vector<128x128xf32>,
    return
  }
  func.func @transform_0(%arg0: i32) -> (i32, i32) {
    %c0_i32 = arith.constant 0 : i32
    %c0_i32_0 = arith.constant 0 : i32
    return %arg0, %c0_i32 : i32, i32
  }
  func.func @transform_1(%arg0: i32) -> (i32, i32) {
    %c0_i32 = arith.constant 0 : i32
    %c0_i32_0 = arith.constant 0 : i32
    %c0_i32_1 = arith.constant 0 : i32
    return %c0_i32, %c0_i32_0 : i32, i32
  }
  func.func @transform_2(%arg0: i32) -> (i32, i32) {
    %c0_i32 = arith.constant 0 : i32
    %c0_i32_0 = arith.constant 0 : i32
    %c0_i32_1 = arith.constant 0 : i32
    return %c0_i32, %c0_i32_0 : i32, i32
  }
  func.func @transform_3(%arg0: i32) -> (i32, i32) {
    %c0_i32 = arith.constant 0 : i32
    %c0_i32_0 = arith.constant 0 : i32
    return %arg0, %c0_i32 : i32, i32
  }
}

</mosaic_0001>

<bundles_post_ra>
// kernel: directed_gin_conv.5
= control target key start
LH: loop header
LB: loop body
LE: loop exit
PB: predicated region body
PF: predicated region fallthrough
CT: control target
= control target key end

     0   :  { %s214_s0 = inlined_call_operand.vmem [shape: f32[128,128], index: 0, kind: input, shape index: {}]   ;;  %s215_s1 = inlined_call_operand.vmem [shape: f32[1,128], index: 1, kind: input, shape index: {}]   ;;  %s216_s2 = inlined_call_operand.vmem [shape: f32[1,128], index: 2, kind: input, shape index: {}]   ;;  %s217_s3 = inlined_call_operand.vmem [shape: f32[128,128], index: 3, kind: output, shape index: {}]  }
   0x1   :  { %v14_v0 = vld [vmem:[%s214_s0] sm:$0xff]  ;;  %v15_v3 = vld [vmem:[%s214_s0 + $0x8] sm:$0xff]  ;;  %v16_v6 = vld [vmem:[%s214_s0 + $0x10] sm:$0xff] }
   0x2   :  { %v90_v1 = vld [vmem:[%s215_s1] ss:$0 sm:$0xff]  ;;  %v17_v7 = vld [vmem:[%s214_s0 + $0x18] sm:$0xff]  ;;  %v19_v12 = vld [vmem:[%s214_s0 + $0x28] sm:$0xff] }
   0x3   :  { %v91_v2 = vld [vmem:[%s216_s2] ss:$0 sm:$0xff]  ;;  %v34_v4 = vmul.f32 %v90_v1, %v14_v0  ;;  %v35_v5 = vmul.f32 %v90_v1, %v15_v3  ;;  %v36_v9 = vmul.f32 %v90_v1, %v16_v6  ;;  %v37_v10 = vmul.f32 %v90_v1, %v17_v7  ;;  %v20_v13 = vld [vmem:[%s214_s0 + $0x30] sm:$0xff]  ;;  %v21_v14 = vld [vmem:[%s214_s0 + $0x38] sm:$0xff] }
   0x4   :  { %v18_v8 = vld [vmem:[%s214_s0 + $0x20] sm:$0xff]  ;;  %v39_v17 = vmul.f32 %v90_v1, %v19_v12  ;;  %v40_v18 = vmul.f32 %v90_v1, %v20_v13  ;;  %v23_v20 = vld [vmem:[%s214_s0 + $0x48] sm:$0xff]  ;;  %v41_v23 = vmul.f32 %v90_v1, %v21_v14  ;;  %v24_v24 = vld [vmem:[%s214_s0 + $0x50] sm:$0xff] }
   0x5   :  { %v38_v11 = vmul.f32 %v90_v1, %v18_v8  ;;  %v54_v15 = vadd.f32 %v91_v2, %v34_v4  ;;  %v55_v16 = vadd.f32 %v91_v2, %v35_v5  ;;  %v22_v19 = vld [vmem:[%s214_s0 + $0x40] sm:$0xff]  ;;  %v56_v21 = vadd.f32 %v91_v2, %v36_v9  ;;  %v25_v27 = vld [vmem:[%s214_s0 + $0x58] sm:$0xff]  ;;  %v27_v33 = vld [vmem:[%s214_s0 + $0x68] sm:$0xff] }
   0x6   :  { %v57_v22 = vadd.f32 %v91_v2, %v37_v10  ;;  %v42_v26 = vmul.f32 %v90_v1, %v22_v19  ;;  %v59_v28 = vadd.f32 %v91_v2, %v39_v17  ;;  %v43_v29 = vmul.f32 %v90_v1, %v23_v20  ;;  %v26_v30 = vld [vmem:[%s214_s0 + $0x60] sm:$0xff]  ;;  %v28_v36 = vld [vmem:[%s214_s0 + $0x70] sm:$0xff]  ;;  %v29_v39 = vld [vmem:[%s214_s0 + $0x78] sm:$0xff] }
   0x7   :  { %70 = vst [vmem:[%s217_s3] sm:$0xff] %v54_v15  ;;  %v58_v25 = vadd.f32 %v91_v2, %v38_v11  ;;  %v60_v31 = vadd.f32 %v91_v2, %v40_v18  ;;  %v44_v32 = vmul.f32 %v90_v1, %v24_v24  ;;  %v61_v34 = vadd.f32 %v91_v2, %v41_v23 }
   0x8   :  { %71 = vst [vmem:[%s217_s3 + $0x8] sm:$0xff] %v55_v16  ;;  %v45_v35 = vmul.f32 %v90_v1, %v25_v27  ;;  %v62_v37 = vadd.f32 %v91_v2, %v42_v26  ;;  %v46_v38 = vmul.f32 %v90_v1, %v26_v30  ;;  %v63_v40 = vadd.f32 %v91_v2, %v43_v29 }
   0x9   :  { %72 = vst [vmem:[%s217_s3 + $0x10] sm:$0xff] %v56_v21  ;;  %v47_v41 = vmul.f32 %v90_v1, %v27_v33  ;;  %v64_v42 = vadd.f32 %v91_v2, %v44_v32  ;;  %v48_v43 = vmul.f32 %v90_v1, %v28_v36  ;;  %v49_v45 = vmul.f32 %v90_v1, %v29_v39 }
   0xa   :  { %73 = vst [vmem:[%s217_s3 + $0x18] sm:$0xff] %v57_v22  ;;  %v65_v44 = vadd.f32 %v91_v2, %v45_v35  ;;  %v66_v46 = vadd.f32 %v91_v2, %v46_v38 }
   0xb   :  { %74 = vst [vmem:[%s217_s3 + $0x20] sm:$0xff] %v58_v25  ;;  %v67_v47 = vadd.f32 %v91_v2, %v47_v41  ;;  %v68_v48 = vadd.f32 %v91_v2, %v48_v43  ;;  %v69_v49 = vadd.f32 %v91_v2, %v49_v45 }
   0xc   :  { %75 = vst [vmem:[%s217_s3 + $0x28] sm:$0xff] %v59_v28 }
   0xd   :  { %76 = vst [vmem:[%s217_s3 + $0x30] sm:$0xff] %v60_v31 }
   0xe   :  { %77 = vst [vmem:[%s217_s3 + $0x38] sm:$0xff] %v61_v34 }
   0xf   :  { %78 = vst [vmem:[%s217_s3 + $0x40] sm:$0xff] %v62_v37 }
  0x10   :  { %79 = vst [vmem:[%s217_s3 + $0x48] sm:$0xff] %v63_v40 }
  0x11   :  { %80 = vst [vmem:[%s217_s3 + $0x50] sm:$0xff] %v64_v42 }
  0x12   :  { %81 = vst [vmem:[%s217_s3 + $0x58] sm:$0xff] %v65_v44 }
  0x13   :  { %82 = vst [vmem:[%s217_s3 + $0x60] sm:$0xff] %v66_v46 }
  0x14   :  { %83 = vst [vmem:[%s217_s3 + $0x68] sm:$0xff] %v67_v47 }
  0x15   :  { %84 = vst [vmem:[%s217_s3 + $0x70] sm:$0xff] %v68_v48 }
  0x16   :  { %85 = vst [vmem:[%s217_s3 + $0x78] sm:$0xff] %v69_v49 }

// kernel: directed_gin_conv.3
= control target key start
LH: loop header
LB: loop body
LE: loop exit
PB: predicated region body
PF: predicated region fallthrough
CT: control target
= control target key end

     0   :  { %s609_s1 = inlined_call_operand.vmem [shape: f32[128,128], index: 1, kind: input, shape index: {}]   ;;  %s610_s2 = inlined_call_operand.vmem [shape: f32[128,128], index: 2, kind: input, shape index: {}]   ;;  %s611_s0 = inlined_call_operand.vmem [shape: f32[128,128], index: 0, kind: input, shape index: {}]   ;;  %s612_s3 = inlined_call_operand.vmem [shape: bf16[128,128], index: 3, kind: output, shape index: {0}]   ;;  %s613_s4 = inlined_call_operand.vmem [shape: bf16[128,128], index: 4, kind: output, shape index: {1}]  }
   0x1   :  { %v47_v0 = vld [vmem:[%s609_s1 + $0x78] sm:$0xff]  ;;  %v46_v2 = vld [vmem:[%s609_s1 + $0x70] sm:$0xff]  ;;  %v45_v4 = vld [vmem:[%s609_s1 + $0x68] sm:$0xff] }
   0x2   :  { %v160_v1 = vld [vmem:[%s610_s2 + $0x78] sm:$0xff]  ;;  %48 = vmatpush.msra.mxu0 %v47_v0  ;;  %360 = vmatpush.msra.mxu2 %v47_v0  ;;  %v159_v3 = vld [vmem:[%s610_s2 + $0x70] sm:$0xff]  ;;  %v158_v5 = vld [vmem:[%s610_s2 + $0x68] sm:$0xff] }
   0x3   :  { %161 = vmatpush.msra.mxu1 %v160_v1  ;;  %376 = vmatpush.msra.mxu3 %v160_v1  ;;  %v44_v6 = vld [vmem:[%s609_s1 + $0x60] sm:$0xff]  ;;  %v43_v8 = vld [vmem:[%s609_s1 + $0x58] sm:$0xff]  ;;  %v42_v10 = vld [vmem:[%s609_s1 + $0x50] sm:$0xff] }
   0x4   :  { %49 = vmatpush.msra.mxu0 %v46_v2  ;;  %361 = vmatpush.msra.mxu2 %v46_v2  ;;  %v157_v7 = vld [vmem:[%s610_s2 + $0x60] sm:$0xff]  ;;  %v156_v9 = vld [vmem:[%s610_s2 + $0x58] sm:$0xff]  ;;  %v155_v11 = vld [vmem:[%s610_s2 + $0x50] sm:$0xff] }
   0x5   :  { %162 = vmatpush.msra.mxu1 %v159_v3  ;;  %377 = vmatpush.msra.mxu3 %v159_v3  ;;  %v41_v12 = vld [vmem:[%s609_s1 + $0x48] sm:$0xff]  ;;  %v40_v14 = vld [vmem:[%s609_s1 + $0x40] sm:$0xff]  ;;  %v39_v16 = vld [vmem:[%s609_s1 + $0x38] sm:$0xff] }
   0x6   :  { %50 = vmatpush.msra.mxu0 %v45_v4  ;;  %362 = vmatpush.msra.mxu2 %v45_v4  ;;  %v154_v13 = vld [vmem:[%s610_s2 + $0x48] sm:$0xff]  ;;  %v153_v15 = vld [vmem:[%s610_s2 + $0x40] sm:$0xff]  ;;  %v152_v17 = vld [vmem:[%s610_s2 + $0x38] sm:$0xff] }
   0x7   :  { %163 = vmatpush.msra.mxu1 %v158_v5  ;;  %378 = vmatpush.msra.mxu3 %v158_v5  ;;  %v38_v18 = vld [vmem:[%s609_s1 + $0x30] sm:$0xff]  ;;  %v37_v20 = vld [vmem:[%s609_s1 + $0x28] sm:$0xff]  ;;  %v36_v22 = vld [vmem:[%s609_s1 + $0x20] sm:$0xff] }
   0x8   :  { %51 = vmatpush.msra.mxu0 %v44_v6  ;;  %363 = vmatpush.msra.mxu2 %v44_v6  ;;  %v151_v19 = vld [vmem:[%s610_s2 + $0x30] sm:$0xff]  ;;  %v150_v21 = vld [vmem:[%s610_s2 + $0x28] sm:$0xff]  ;;  %v149_v23 = vld [vmem:[%s610_s2 + $0x20] sm:$0xff] }
   0x9   :  { %164 = vmatpush.msra.mxu1 %v157_v7  ;;  %379 = vmatpush.msra.mxu3 %v157_v7  ;;  %v35_v24 = vld [vmem:[%s609_s1 + $0x18] sm:$0xff]  ;;  %v34_v26 = vld [vmem:[%s609_s1 + $0x10] sm:$0xff]  ;;  %v33_v28 = vld [vmem:[%s609_s1 + $0x8] sm:$0xff] }
   0xa   :  { %52 = vmatpush.msra.mxu0 %v43_v8  ;;  %364 = vmatpush.msra.mxu2 %v43_v8  ;;  %v148_v25 = vld [vmem:[%s610_s2 + $0x18] sm:$0xff]  ;;  %v147_v27 = vld [vmem:[%s610_s2 + $0x10] sm:$0xff]  ;;  %v146_v29 = vld [vmem:[%s610_s2 + $0x8] sm:$0xff] }
   0xb   :  { %165 = vmatpush.msra.mxu1 %v156_v9  ;;  %380 = vmatpush.msra.mxu3 %v156_v9  ;;  %v32_v30 = vld [vmem:[%s609_s1] sm:$0xff]  ;;  %v17_v34 = vld [vmem:[%s611_s0 + $0x8] sm:$0xff]  ;;  %v18_v36 = vld [vmem:[%s611_s0 + $0x10] sm:$0xff] }
   0xc   :  { %53 = vmatpush.msra.mxu0 %v42_v10  ;;  %365 = vmatpush.msra.mxu2 %v42_v10  ;;  %v145_v31 = vld [vmem:[%s610_s2] sm:$0xff]  ;;  %v25_v35 = vld [vmem:[%s611_s0 + $0x48] sm:$0xff]  ;;  %v26_v37 = vld [vmem:[%s611_s0 + $0x50] sm:$0xff] }
   0xd   :  { %166 = vmatpush.msra.mxu1 %v155_v11  ;;  %381 = vmatpush.msra.mxu3 %v155_v11  ;;  %v16_v32 = vld [vmem:[%s611_s0] sm:$0xff]  ;;  %v19_v38 = vld [vmem:[%s611_s0 + $0x18] sm:$0xff]  ;;  %v21_v42 = vld [vmem:[%s611_s0 + $0x28] sm:$0xff] }
   0xe   :  { %54 = vmatpush.msra.mxu0 %v41_v12  ;;  %366 = vmatpush.msra.mxu2 %v41_v12  ;;  %v24_v33 = vld [vmem:[%s611_s0 + $0x40] sm:$0xff]  ;;  %v27_v39 = vld [vmem:[%s611_s0 + $0x58] sm:$0xff]  ;;  %v29_v43 = vld [vmem:[%s611_s0 + $0x68] sm:$0xff] }
   0xf   :  { %167 = vmatpush.msra.mxu1 %v154_v13  ;;  %382 = vmatpush.msra.mxu3 %v154_v13  ;;  %v20_v40 = vld [vmem:[%s611_s0 + $0x20] sm:$0xff]  ;;  %v22_v44 = vld [vmem:[%s611_s0 + $0x30] sm:$0xff]  ;;  %v23_v46 = vld [vmem:[%s611_s0 + $0x38] sm:$0xff] }
  0x10   :  { %55 = vmatpush.msra.mxu0 %v40_v14  ;;  %367 = vmatpush.msra.mxu2 %v40_v14  ;;  %v28_v41 = vld [vmem:[%s611_s0 + $0x60] sm:$0xff]  ;;  %v30_v45 = vld [vmem:[%s611_s0 + $0x70] sm:$0xff]  ;;  %v31_v47 = vld [vmem:[%s611_s0 + $0x78] sm:$0xff] }
  0x11   :  { %168 = vmatpush.msra.mxu1 %v153_v15  ;;  %383 = vmatpush.msra.mxu3 %v153_v15 }
  0x12   :  { %56 = vmatpush.msra.mxu0 %v39_v16  ;;  %368 = vmatpush.msra.mxu2 %v39_v16 }
  0x13   :  { %169 = vmatpush.msra.mxu1 %v152_v17  ;;  %384 = vmatpush.msra.mxu3 %v152_v17 }
  0x14   :  { %57 = vmatpush.msra.mxu0 %v38_v18  ;;  %369 = vmatpush.msra.mxu2 %v38_v18 }
  0x15   :  { %170 = vmatpush.msra.mxu1 %v151_v19  ;;  %385 = vmatpush.msra.mxu3 %v151_v19 }
  0x16   :  { %58 = vmatpush.msra.mxu0 %v37_v20  ;;  %370 = vmatpush.msra.mxu2 %v37_v20 }
  0x17   :  { %171 = vmatpush.msra.mxu1 %v150_v21  ;;  %386 = vmatpush.msra.mxu3 %v150_v21 }
  0x18   :  { %59 = vmatpush.msra.mxu0 %v36_v22  ;;  %371 = vmatpush.msra.mxu2 %v36_v22 }
  0x19   :  { %172 = vmatpush.msra.mxu1 %v149_v23  ;;  %387 = vmatpush.msra.mxu3 %v149_v23 }
  0x1a   :  { %60 = vmatpush.msra.mxu0 %v35_v24  ;;  %372 = vmatpush.msra.mxu2 %v35_v24 }
  0x1b   :  { %173 = vmatpush.msra.mxu1 %v148_v25  ;;  %388 = vmatpush.msra.mxu3 %v148_v25 }
  0x1c   :  { %61 = vmatpush.msra.mxu0 %v34_v26  ;;  %373 = vmatpush.msra.mxu2 %v34_v26 }
  0x1d   :  { %174 = vmatpush.msra.mxu1 %v147_v27  ;;  %389 = vmatpush.msra.mxu3 %v147_v27 }
  0x1e   :  { %62 = vmatpush.msra.mxu0 %v33_v28  ;;  %374 = vmatpush.msra.mxu2 %v33_v28 }
  0x1f   :  { %175 = vmatpush.msra.mxu1 %v146_v29  ;;  %390 = vmatpush.msra.mxu3 %v146_v29 }
  0x20   :  { %63 = vmatpush.msra.mxu0 %v32_v30  ;;  %375 = vmatpush.msra.mxu2 %v32_v30 }
  0x21   :  { %176 = vmatpush.msra.mxu1 %v145_v31  ;;  %391 = vmatpush.msra.mxu3 %v145_v31 }
  0x22   :  { %64 = vmatmul.f32.vlgmr.msra.gmra.mxu0 %v16_v32  ;;  %88 = vmatmul.f32.vlgmr.msra.gmra.mxu2 %v24_v33 }
  0x23   :  { %177 = vmatmul.f32.vlgmr.msra.gmra.mxu1 %v16_v32  ;;  %201 = vmatmul.f32.vlgmr.msra.gmra.mxu3 %v24_v33 }
  0x2a   :  { %67 = vmatmul.f32.gmra.mxu0 %v17_v34  ;;  %91 = vmatmul.f32.gmra.mxu2 %v25_v35 }
  0x2b   :  { %180 = vmatmul.f32.gmra.mxu1 %v17_v34  ;;  %204 = vmatmul.f32.gmra.mxu3 %v25_v35 }
  0x32   :  { %70 = vmatmul.f32.gmra.mxu0 %v18_v36  ;;  %94 = vmatmul.f32.gmra.mxu2 %v26_v37 }
  0x33   :  { %183 = vmatmul.f32.gmra.mxu1 %v18_v36  ;;  %207 = vmatmul.f32.gmra.mxu3 %v26_v37 }
  0x3a   :  { %73 = vmatmul.f32.gmra.mxu0 %v19_v38  ;;  %97 = vmatmul.f32.gmra.mxu2 %v27_v39 }
  0x3b   :  { %186 = vmatmul.f32.gmra.mxu1 %v19_v38  ;;  %210 = vmatmul.f32.gmra.mxu3 %v27_v39 }
  0x42   :  { %76 = vmatmul.f32.gmra.mxu0 %v20_v40  ;;  %100 = vmatmul.f32.gmra.mxu2 %v28_v41 }
  0x43   :  { %189 = vmatmul.f32.gmra.mxu1 %v20_v40  ;;  %213 = vmatmul.f32.gmra.mxu3 %v28_v41 }
  0x4a   :  { %79 = vmatmul.f32.gmra.mxu0 %v21_v42  ;;  %103 = vmatmul.f32.gmra.mxu2 %v29_v43 }
  0x4b   :  { %192 = vmatmul.f32.gmra.mxu1 %v21_v42  ;;  %216 = vmatmul.f32.gmra.mxu3 %v29_v43 }
  0x52   :  { %82 = vmatmul.f32.gmra.mxu0 %v22_v44  ;;  %106 = vmatmul.f32.gmra.mxu2 %v30_v45 }
  0x53   :  { %195 = vmatmul.f32.gmra.mxu1 %v22_v44  ;;  %219 = vmatmul.f32.gmra.mxu3 %v30_v45 }
  0x5a   :  { %85 = vmatmul.f32.gmra.mxu0 %v23_v46  ;;  %109 = vmatmul.f32.gmra.mxu2 %v31_v47 }
  0x5b   :  { %198 = vmatmul.f32.gmra.mxu1 %v23_v46  ;;  %222 = vmatmul.f32.gmra.mxu3 %v31_v47 }
  0x9f   :  { %v65_v48 = vpop.f32.mrf.mxu0 }
  0xa0   :  { %v178_v49 = vpop.f32.mrf.mxu1 }
  0xa5   :  { %v89_v50 = vpop.f32.mrf.mxu2 }
  0xa6   :  { %v202_v51 = vpop.f32.mrf.mxu3 }
  0xa7   :  { %v68_v52 = vpop.f32.mrf.mxu0 }
  0xa8   :  { %v269_v53 = vpack.c.bf16 %v68_v52, %v65_v48  ;;  %v181_v54 = vpop.f32.mrf.mxu1 }
  0xa9   :  { %v309_v55 = vpack.c.bf16 %v181_v54, %v178_v49 }
  0xaa   :  { %270 = vst [vmem:[%s612_s3] sm:$0xff] %v269_v53  }
  0xab   :  { %310 = vst [vmem:[%s613_s4] sm:$0xff] %v309_v55  }
  0xad   :  { %v92_v56 = vpop.f32.mrf.mxu2 }
  0xae   :  { %v289_v57 = vpack.c.bf16 %v92_v56, %v89_v50  ;;  %v205_v58 = vpop.f32.mrf.mxu3 }
  0xaf   :  { %v329_v59 = vpack.c.bf16 %v205_v58, %v202_v51  ;;  %v71_v60 = vpop.f32.mrf.mxu0 }
  0xb0   :  { %349 = vst [vmem:[%s612_s3 + $0x20] sm:$0xff] %v289_v57   ;;  %v184_v61 = vpop.f32.mrf.mxu1 }
  0xb1   :  { %356 = vst [vmem:[%s613_s4 + $0x20] sm:$0xff] %v329_v59  }
  0xb5   :  { %v95_v62 = vpop.f32.mrf.mxu2 }
  0xb6   :  { %v208_v63 = vpop.f32.mrf.mxu3 }
  0xb7   :  { %v74_v0 = vpop.f32.mrf.mxu0 }
  0xb8   :  { %v274_v1 = vpack.c.bf16 %v74_v0, %v71_v60  ;;  %v187_v2 = vpop.f32.mrf.mxu1 }
  0xb9   :  { %v314_v3 = vpack.c.bf16 %v187_v2, %v184_v61 }
  0xba   :  { %346 = vst [vmem:[%s612_s3 + $0x8] sm:$0xff] %v274_v1  }
  0xbb   :  { %353 = vst [vmem:[%s613_s4 + $0x8] sm:$0xff] %v314_v3  }
  0xbd   :  { %v98_v4 = vpop.f32.mrf.mxu2 }
  0xbe   :  { %v294_v5 = vpack.c.bf16 %v98_v4, %v95_v62  ;;  %v211_v6 = vpop.f32.mrf.mxu3 }
  0xbf   :  { %v334_v7 = vpack.c.bf16 %v211_v6, %v208_v63  ;;  %v77_v8 = vpop.f32.mrf.mxu0 }
  0xc0   :  { %350 = vst [vmem:[%s612_s3 + $0x28] sm:$0xff] %v294_v5   ;;  %v190_v9 = vpop.f32.mrf.mxu1 }
  0xc1   :  { %357 = vst [vmem:[%s613_s4 + $0x28] sm:$0xff] %v334_v7  }
  0xc5   :  { %v101_v10 = vpop.f32.mrf.mxu2 }
  0xc6   :  { %v214_v11 = vpop.f32.mrf.mxu3 }
  0xc7   :  { %v80_v12 = vpop.f32.mrf.mxu0 }
  0xc8   :  { %v279_v13 = vpack.c.bf16 %v80_v12, %v77_v8  ;;  %v193_v14 = vpop.f32.mrf.mxu1 }
  0xc9   :  { %v319_v15 = vpack.c.bf16 %v193_v14, %v190_v9 }
  0xca   :  { %347 = vst [vmem:[%s612_s3 + $0x10] sm:$0xff] %v279_v13  }
  0xcb   :  { %354 = vst [vmem:[%s613_s4 + $0x10] sm:$0xff] %v319_v15  }
  0xcd   :  { %v104_v16 = vpop.f32.mrf.mxu2 }
  0xce   :  { %v299_v17 = vpack.c.bf16 %v104_v16, %v101_v10  ;;  %v217_v18 = vpop.f32.mrf.mxu3 }
  0xcf   :  { %v339_v19 = vpack.c.bf16 %v217_v18, %v214_v11  ;;  %v83_v20 = vpop.f32.mrf.mxu0 }
  0xd0   :  { %351 = vst [vmem:[%s612_s3 + $0x30] sm:$0xff] %v299_v17   ;;  %v196_v21 = vpop.f32.mrf.mxu1 }
  0xd1   :  { %358 = vst [vmem:[%s613_s4 + $0x30] sm:$0xff] %v339_v19  }
  0xd5   :  { %v107_v22 = vpop.f32.mrf.mxu2 }
  0xd6   :  { %v220_v23 = vpop.f32.mrf.mxu3 }
  0xd7   :  { %v86_v24 = vpop.f32.mrf.mxu0 }
  0xd8   :  { %v284_v25 = vpack.c.bf16 %v86_v24, %v83_v20  ;;  %v199_v26 = vpop.f32.mrf.mxu1 }
  0xd9   :  { %v324_v27 = vpack.c.bf16 %v199_v26, %v196_v21 }
  0xda   :  { %348 = vst [vmem:[%s612_s3 + $0x18] sm:$0xff] %v284_v25  }
  0xdb   :  { %355 = vst [vmem:[%s613_s4 + $0x18] sm:$0xff] %v324_v27  }
  0xdd   :  { %v110_v28 = vpop.f32.mrf.mxu2 }
  0xde   :  { %v304_v29 = vpack.c.bf16 %v110_v28, %v107_v22  ;;  %v223_v30 = vpop.f32.mrf.mxu3 }
  0xdf   :  { %v344_v31 = vpack.c.bf16 %v223_v30, %v220_v23 }
  0xe0   :  { %352 = vst [vmem:[%s612_s3 + $0x38] sm:$0xff] %v304_v29  }
  0xe1   :  { %359 = vst [vmem:[%s613_s4 + $0x38] sm:$0xff] %v344_v31  }

// kernel: directed_gin_conv.4
= control target key start
LH: loop header
LB: loop body
LE: loop exit
PB: predicated region body
PF: predicated region fallthrough
CT: control target
= control target key end

     0   :  { %s1891_s2 = inlined_call_operand.vmem [shape: bf16[128,128], index: 2, kind: input, shape index: {}]   ;;  %s1892_s3 = inlined_call_operand.vmem [shape: bf16[128,128], index: 3, kind: input, shape index: {}]   ;;  %s1893_s0 = inlined_call_operand.vmem [shape: bf16[128,128], index: 0, kind: input, shape index: {}]   ;;  %s1894_s1 = inlined_call_operand.vmem [shape: bf16[128,128], index: 1, kind: input, shape index: {}]   ;;  %s1895_s7 = inlined_call_operand.vmem [shape: f32[1,128], index: 7, kind: input, shape index: {}]   ;;  %s1896_s4 = inlined_call_operand.vmem [shape: f32[1,128], index: 4, kind: input, shape index: {}]   ;;  %s1897_s8 = inlined_call_operand.vmem [shape: f32[128,128], index: 8, kind: input, shape index: {}]   ;;  %s1898_s5 = inlined_call_operand.vmem [shape: f32[128,128], index: 5, kind: input, shape index: {}]   ;;  %s1899_s9 = inlined_call_operand.vmem [shape: f32[1,128], index: 9, kind: input, shape index: {}]   ;;  %s1900_s6 = inlined_call_operand.vmem [shape: f32[1,128], index: 6, kind: input, shape index: {}]   ;;  %s1901_s10 = inlined_call_operand.vmem [shape: f32[128,128], index: 10, kind: output, shape index: {0}]   ;;  %s1902_s11 = inlined_call_operand.vmem [shape: f32[8,128], index: 11, kind: output, shape index: {1}]   ;;  %s1903_s12 = inlined_call_operand.vmem [shape: f32[8,128], index: 12, kind: output, shape index: {2}]  }
   0x1   :  { %v1310_v0 = vld [vmem:[%s1891_s2 + $0x38] sm:$0xff]  ;;  %v1309_v2 = vld [vmem:[%s1891_s2 + $0x30] sm:$0xff]  ;;  %v1308_v4 = vld [vmem:[%s1891_s2 + $0x28] sm:$0xff] }
   0x2   :  { %v1318_v1 = vld [vmem:[%s1892_s3 + $0x38] sm:$0xff]  ;;  %241 = vmatpush.bf16.msra.mxu0 %v1310_v0  ;;  %v1317_v3 = vld [vmem:[%s1892_s3 + $0x30] sm:$0xff]  ;;  %v1316_v5 = vld [vmem:[%s1892_s3 + $0x28] sm:$0xff] }
   0x3   :  { %450 = vmatpush.bf16.msra.mxu1 %v1318_v1  ;;  %v1307_v6 = vld [vmem:[%s1891_s2 + $0x20] sm:$0xff]  ;;  %v1306_v8 = vld [vmem:[%s1891_s2 + $0x18] sm:$0xff]  ;;  %v1305_v10 = vld [vmem:[%s1891_s2 + $0x10] sm:$0xff] }
   0x4   :  { %v1315_v7 = vld [vmem:[%s1892_s3 + $0x20] sm:$0xff]  ;;  %v1314_v9 = vld [vmem:[%s1892_s3 + $0x18] sm:$0xff]  ;;  %v1313_v11 = vld [vmem:[%s1892_s3 + $0x10] sm:$0xff] }
   0x5   :  { %v1304_v12 = vld [vmem:[%s1891_s2 + $0x8] sm:$0xff]  ;;  %v1303_v14 = vld [vmem:[%s1891_s2] sm:$0xff]  ;;  %v1321_v20 = vld [vmem:[%s1893_s0 + $0x10] sm:$0xff] }
   0x6   :  { %242 = vmatpush.bf16.msra.mxu0 %v1309_v2  ;;  %v1312_v13 = vld [vmem:[%s1892_s3 + $0x8] sm:$0xff]  ;;  %v1311_v15 = vld [vmem:[%s1892_s3] sm:$0xff]  ;;  %v1329_v21 = vld [vmem:[%s1894_s1 + $0x10] sm:$0xff] }
   0x7   :  { %451 = vmatpush.bf16.msra.mxu1 %v1317_v3  ;;  %v1319_v16 = vld [vmem:[%s1893_s0] sm:$0xff]  ;;  %v1320_v18 = vld [vmem:[%s1893_s0 + $0x8] sm:$0xff]  ;;  %v1322_v22 = vld [vmem:[%s1893_s0 + $0x18] sm:$0xff] }
   0x8   :  { %v1327_v17 = vld [vmem:[%s1894_s1] sm:$0xff]  ;;  %v1328_v19 = vld [vmem:[%s1894_s1 + $0x8] sm:$0xff]  ;;  %v1330_v23 = vld [vmem:[%s1894_s1 + $0x18] sm:$0xff] }
   0x9   :  { %v1323_v24 = vld [vmem:[%s1893_s0 + $0x20] sm:$0xff]  ;;  %v857_v26 = vld [vmem:[%s1897_s8 + $0x78] sm:$0xff]  ;;  %v856_v27 = vld [vmem:[%s1897_s8 + $0x70] sm:$0xff] }
   0xa   :  { %243 = vmatpush.bf16.msra.mxu0 %v1308_v4  ;;  %v1331_v25 = vld [vmem:[%s1894_s1 + $0x20] sm:$0xff]  ;;  %862 = vmatpush.msra.mxu3 %v857_v26  ;;  %v688_v28 = vld [vmem:[%s1898_s5 + $0x78] sm:$0xff]  ;;  %v855_v29 = vld [vmem:[%s1897_s8 + $0x68] sm:$0xff] }
   0xb   :  { %452 = vmatpush.bf16.msra.mxu1 %v1316_v5  ;;  %693 = vmatpush.msra.mxu2 %v688_v28  ;;  %v854_v30 = vld [vmem:[%s1897_s8 + $0x60] sm:$0xff]  ;;  %v853_v31 = vld [vmem:[%s1897_s8 + $0x58] sm:$0xff]  ;;  %v687_v32 = vld [vmem:[%s1898_s5 + $0x70] sm:$0xff] }
   0xc   :  { %863 = vmatpush.msra.mxu3 %v856_v27  ;;  %v686_v33 = vld [vmem:[%s1898_s5 + $0x68] sm:$0xff]  ;;  %v685_v36 = vld [vmem:[%s1898_s5 + $0x60] sm:$0xff]  ;;  %v852_v37 = vld [vmem:[%s1897_s8 + $0x50] sm:$0xff] }
   0xd   :  { %694 = vmatpush.msra.mxu2 %v687_v32  ;;  %v1324_v34 = vld [vmem:[%s1893_s0 + $0x28] sm:$0xff]  ;;  %v684_v38 = vld [vmem:[%s1898_s5 + $0x58] sm:$0xff]  ;;  %v850_v40 = vld [vmem:[%s1897_s8 + $0x40] sm:$0xff] }
   0xe   :  { %244 = vmatpush.bf16.msra.mxu0 %v1307_v6  ;;  %864 = vmatpush.msra.mxu3 %v855_v29  ;;  %v1332_v35 = vld [vmem:[%s1894_s1 + $0x28] sm:$0xff]  ;;  %v683_v41 = vld [vmem:[%s1898_s5 + $0x50] sm:$0xff]  ;;  %v849_v43 = vld [vmem:[%s1897_s8 + $0x38] sm:$0xff] }
   0xf   :  { %453 = vmatpush.bf16.msra.mxu1 %v1315_v7  ;;  %695 = vmatpush.msra.mxu2 %v686_v33  ;;  %v851_v39 = vld [vmem:[%s1897_s8 + $0x48] sm:$0xff]  ;;  %v848_v44 = vld [vmem:[%s1897_s8 + $0x30] sm:$0xff]  ;;  %v681_v45 = vld [vmem:[%s1898_s5 + $0x40] sm:$0xff] }
  0x10   :  { %865 = vmatpush.msra.mxu3 %v854_v30  ;;  %v682_v42 = vld [vmem:[%s1898_s5 + $0x48] sm:$0xff]  ;;  %v680_v47 = vld [vmem:[%s1898_s5 + $0x38] sm:$0xff]  ;;  %v679_v48 = vld [vmem:[%s1898_s5 + $0x30] sm:$0xff] }
  0x11   :  { %696 = vmatpush.msra.mxu2 %v685_v36  ;;  %v847_v46 = vld [vmem:[%s1897_s8 + $0x28] sm:$0xff]  ;;  %v846_v49 = vld [vmem:[%s1897_s8 + $0x20] sm:$0xff]  ;;  %v1325_v51 = vld [vmem:[%s1893_s0 + $0x30] sm:$0xff] }
  0x12   :  { %245 = vmatpush.bf16.msra.mxu0 %v1306_v8  ;;  %866 = vmatpush.msra.mxu3 %v853_v31  ;;  %v678_v50 = vld [vmem:[%s1898_s5 + $0x28] sm:$0xff]  ;;  %v1333_v52 = vld [vmem:[%s1894_s1 + $0x30] sm:$0xff]  ;;  %v845_v53 = vld [vmem:[%s1897_s8 + $0x18] sm:$0xff] }
  0x13   :  { %454 = vmatpush.bf16.msra.mxu1 %v1314_v9  ;;  %697 = vmatpush.msra.mxu2 %v684_v38  ;;  %v677_v54 = vld [vmem:[%s1898_s5 + $0x20] sm:$0xff]  ;;  %v844_v55 = vld [vmem:[%s1897_s8 + $0x10] sm:$0xff]  ;;  %v843_v56 = vld [vmem:[%s1897_s8 + $0x8] sm:$0xff] }
  0x14   :  { %867 = vmatpush.msra.mxu3 %v852_v37  ;;  %v676_v57 = vld [vmem:[%s1898_s5 + $0x18] sm:$0xff]  ;;  %v675_v58 = vld [vmem:[%s1898_s5 + $0x10] sm:$0xff]  ;;  %v842_v59 = vld [vmem:[%s1897_s8] sm:$0xff] }
  0x15   :  { %698 = vmatpush.msra.mxu2 %v683_v41  ;;  %v674_v60 = vld [vmem:[%s1898_s5 + $0x8] sm:$0xff]  ;;  %v673_v61 = vld [vmem:[%s1898_s5] sm:$0xff]  ;;  %v1326_v62 = vld [vmem:[%s1893_s0 + $0x38] sm:$0xff] }
  0x16   :  { %246 = vmatpush.bf16.msra.mxu0 %v1305_v10  ;;  %868 = vmatpush.msra.mxu3 %v851_v39  ;;  %v1334_v63 = vld [vmem:[%s1894_s1 + $0x38] sm:$0xff]  ;;  %v1368_v0 = vld [vmem:[%s1892_s3] sm:$0xff]   ;;  %v1407_v41 = vld [vmem:[%s1892_s3 + $0x10] sm:$0xff]  }
  0x17   :  { %455 = vmatpush.bf16.msra.mxu1 %v1313_v11  ;;  %699 = vmatpush.msra.mxu2 %v682_v42  ;;  %v1336_v1 = vld [vmem:[%s1891_s2] sm:$0xff]   ;;  %v1369_v2 = vunpack.c.l.bf16 %v1368_v0 }
  0x18   :  { %869 = vmatpush.msra.mxu3 %v850_v40  ;;  %v1684_v3 = vld [vmem:[%s1895_s7] ss:$0 sm:$0xff]  ;;  %v1337_v4 = vunpack.c.l.bf16 %v1336_v1 }
  0x19   :  { %700 = vmatpush.msra.mxu2 %v681_v45  ;;  %v1689_v8 = vld [vmem:[%s1896_s4] ss:$0 sm:$0xff] }
  0x1a   :  { %247 = vmatpush.bf16.msra.mxu0 %v1304_v12  ;;  %870 = vmatpush.msra.mxu3 %v849_v43  ;;  %v1370_v12 = vunpack.c.h.bf16 %v1368_v0 }
  0x1b   :  { %456 = vmatpush.bf16.msra.mxu1 %v1312_v13  ;;  %701 = vmatpush.msra.mxu2 %v680_v47 }
  0x1c   :  { %871 = vmatpush.msra.mxu3 %v848_v44  ;;  %v1400_v44 = vld [vmem:[%s1891_s2 + $0x10] sm:$0xff]  }
  0x1d   :  { %702 = vmatpush.msra.mxu2 %v679_v48 }
  0x1e   :  { %248 = vmatpush.bf16.msra.mxu0 %v1303_v14  ;;  %872 = vmatpush.msra.mxu3 %v847_v46  ;;  %v1377_v46 = vunpack.c.l.bf16 %v1407_v41 }
  0x1f   :  { %457 = vmatpush.bf16.msra.mxu1 %v1311_v15  ;;  %703 = vmatpush.msra.mxu2 %v678_v50  ;;  %v1338_v15 = vunpack.c.h.bf16 %v1336_v1 }
  0x20   :  { %873 = vmatpush.msra.mxu3 %v846_v49  ;;  %v1345_v49 = vunpack.c.l.bf16 %v1400_v44 }
  0x21   :  { %249 = vmatmul.bf16.vlgmr.msra.gmra.mxu0 %v1319_v16  ;;  %704 = vmatpush.msra.mxu2 %v677_v54 }
  0x22   :  { %458 = vmatmul.bf16.vlgmr.msra.gmra.mxu1 %v1327_v17  ;;  %874 = vmatpush.msra.mxu3 %v845_v53 }
  0x23   :  { %705 = vmatpush.msra.mxu2 %v676_v57 }
  0x24   :  { %875 = vmatpush.msra.mxu3 %v844_v55 }
  0x25   :  { %706 = vmatpush.msra.mxu2 %v675_v58 }
  0x26   :  { %876 = vmatpush.msra.mxu3 %v843_v56  ;;  %v1378_v56 = vunpack.c.h.bf16 %v1407_v41 }
  0x27   :  { %707 = vmatpush.msra.mxu2 %v674_v60 }
  0x28   :  { %877 = vmatpush.msra.mxu3 %v842_v59  ;;  %v1346_v59 = vunpack.c.h.bf16 %v1400_v44 }
  0x29   :  { %708 = vmatpush.msra.mxu2 %v673_v61 }
  0x31   :  { %254 = vmatmul.bf16.gmra.mxu0 %v1320_v18 }
  0x32   :  { %463 = vmatmul.bf16.gmra.mxu1 %v1328_v19  ;;  %v1406_v19 = vld [vmem:[%s1892_s3 + $0x8] sm:$0xff]  }
  0x41   :  { %259 = vmatmul.bf16.gmra.mxu0 %v1321_v20 }
  0x42   :  { %468 = vmatmul.bf16.gmra.mxu1 %v1329_v21 }
  0x51   :  { %264 = vmatmul.bf16.gmra.mxu0 %v1322_v22  ;;  %v1399_v22 = vld [vmem:[%s1891_s2 + $0x8] sm:$0xff]  }
  0x52   :  { %473 = vmatmul.bf16.gmra.mxu1 %v1330_v23  ;;  %v1341_v27 = vunpack.c.l.bf16 %v1399_v22  ;;  %v1342_v37 = vunpack.c.h.bf16 %v1399_v22 }
  0x61   :  { %269 = vmatmul.bf16.gmra.mxu0 %v1323_v24  ;;  %v1373_v24 = vunpack.c.l.bf16 %v1406_v19 }
  0x62   :  { %478 = vmatmul.bf16.gmra.mxu1 %v1331_v25 }
  0x71   :  { %274 = vmatmul.bf16.gmra.mxu0 %v1324_v34  ;;  %v1374_v34 = vunpack.c.h.bf16 %v1406_v19 }
  0x72   :  { %483 = vmatmul.bf16.gmra.mxu1 %v1332_v35 }
  0x81   :  { %279 = vmatmul.bf16.gmra.mxu0 %v1325_v51 }
  0x82   :  { %488 = vmatmul.bf16.gmra.mxu1 %v1333_v52 }
  0x91   :  { %284 = vmatmul.bf16.gmra.mxu0 %v1326_v62 }
  0x92   :  { %493 = vmatmul.bf16.gmra.mxu1 %v1334_v63  ;;  %v1408_v63 = vld [vmem:[%s1892_s3 + $0x18] sm:$0xff]  }
  0x9e   :  { %v250_v5 = vpop.f32.mrf.mxu0 }
  0x9f   :  { %v459_v6 = vpop.f32.mrf.mxu1  ;;  %v621_v10 = vadd.f32 %v1337_v4, %v250_v5  ;;  %v1381_v5 = vunpack.c.l.bf16 %v1408_v63 }
  0xa0   :  { %v790_v7 = vadd.f32 %v1369_v2, %v459_v6  ;;  %v1401_v2 = vld [vmem:[%s1891_s2 + $0x18] sm:$0xff]  }
  0xa1   :  { %v641_v13 = vadd.f32 %v1689_v8, %v621_v10  ;;  %v1350_v19 = vunpack.c.h.bf16 %v1401_v2 }
  0xa2   :  { %v810_v9 = vadd.f32 %v1684_v3, %v790_v7 }
  0xa3   :  { %v657_v14 = vmax.f32 %v641_v13, 0.0 }
  0xa4   :  { %v826_v11 = vmax.f32 %v810_v9, 0.0  ;;  %v1349_v9 = vunpack.c.l.bf16 %v1401_v2 }
  0xa5   :  { %709 = vmatmul.f32.vlgmr.msra.gmra.mxu2 %v657_v14 }
  0xa6   :  { %878 = vmatmul.f32.vlgmr.msra.gmra.mxu3 %v826_v11  ;;  %v252_v16 = vpop.f32.mrf.mxu0 }
  0xa7   :  { %v461_v17 = vpop.f32.mrf.mxu1  ;;  %v622_v21 = vadd.f32 %v1338_v15, %v252_v16  ;;  %v1382_v16 = vunpack.c.h.bf16 %v1408_v63 }
  0xa8   :  { %v791_v18 = vadd.f32 %v1370_v12, %v461_v17 }
  0xa9   :  { %v642_v25 = vadd.f32 %v1689_v8, %v622_v21 }
  0xaa   :  { %v811_v20 = vadd.f32 %v1684_v3, %v791_v18 }
  0xab   :  { %v658_v26 = vmax.f32 %v642_v25, 0.0 }
  0xac   :  { %v827_v23 = vmax.f32 %v811_v20, 0.0 }
  0xad   :  { %712 = vmatmul.f32.gmra.mxu2 %v658_v26  ;;  %v1402_v26 = vld [vmem:[%s1891_s2 + $0x20] sm:$0xff]  }
  0xae   :  { %881 = vmatmul.f32.gmra.mxu3 %v827_v23  ;;  %v255_v28 = vpop.f32.mrf.mxu0  ;;  %v1409_v23 = vld [vmem:[%s1892_s3 + $0x20] sm:$0xff]   ;;  %v1354_v41 = vunpack.c.h.bf16 %v1402_v26 }
  0xaf   :  { %v464_v29 = vpop.f32.mrf.mxu1  ;;  %v623_v32 = vadd.f32 %v1341_v27, %v255_v28  ;;  %v1385_v28 = vunpack.c.l.bf16 %v1409_v23 }
  0xb0   :  { %v792_v30 = vadd.f32 %v1373_v24, %v464_v29 }
  0xb1   :  { %v643_v35 = vadd.f32 %v1689_v8, %v623_v32 }
  0xb2   :  { %v812_v31 = vadd.f32 %v1684_v3, %v792_v30 }
  0xb3   :  { %v659_v36 = vmax.f32 %v643_v35, 0.0 }
  0xb4   :  { %v828_v33 = vmax.f32 %v812_v31, 0.0  ;;  %v1353_v31 = vunpack.c.l.bf16 %v1402_v26 }
  0xb5   :  { %715 = vmatmul.f32.gmra.mxu2 %v659_v36 }
  0xb6   :  { %884 = vmatmul.f32.gmra.mxu3 %v828_v33  ;;  %v257_v38 = vpop.f32.mrf.mxu0 }
  0xb7   :  { %v466_v39 = vpop.f32.mrf.mxu1  ;;  %v624_v43 = vadd.f32 %v1342_v37, %v257_v38  ;;  %v1386_v38 = vunpack.c.h.bf16 %v1409_v23 }
  0xb8   :  { %v793_v40 = vadd.f32 %v1374_v34, %v466_v39 }
  0xb9   :  { %v644_v47 = vadd.f32 %v1689_v8, %v624_v43 }
  0xba   :  { %v813_v42 = vadd.f32 %v1684_v3, %v793_v40 }
  0xbb   :  { %v660_v48 = vmax.f32 %v644_v47, 0.0 }
  0xbc   :  { %v829_v45 = vmax.f32 %v813_v42, 0.0 }
  0xbd   :  { %718 = vmatmul.f32.gmra.mxu2 %v660_v48  ;;  %v1403_v48 = vld [vmem:[%s1891_s2 + $0x28] sm:$0xff]  }
  0xbe   :  { %887 = vmatmul.f32.gmra.mxu3 %v829_v45  ;;  %v260_v50 = vpop.f32.mrf.mxu0  ;;  %v1410_v45 = vld [vmem:[%s1892_s3 + $0x28] sm:$0xff]   ;;  %v1358_v63 = vunpack.c.h.bf16 %v1403_v48 }
  0xbf   :  { %v469_v51 = vpop.f32.mrf.mxu1  ;;  %v625_v54 = vadd.f32 %v1345_v49, %v260_v50  ;;  %v1389_v50 = vunpack.c.l.bf16 %v1410_v45 }
  0xc0   :  { %v794_v52 = vadd.f32 %v1377_v46, %v469_v51 }
  0xc1   :  { %v645_v57 = vadd.f32 %v1689_v8, %v625_v54 }
  0xc2   :  { %v814_v53 = vadd.f32 %v1684_v3, %v794_v52 }
  0xc3   :  { %v661_v58 = vmax.f32 %v645_v57, 0.0 }
  0xc4   :  { %v830_v55 = vmax.f32 %v814_v53, 0.0  ;;  %v1357_v53 = vunpack.c.l.bf16 %v1403_v48 }
  0xc5   :  { %721 = vmatmul.f32.gmra.mxu2 %v661_v58 }
  0xc6   :  { %890 = vmatmul.f32.gmra.mxu3 %v830_v55  ;;  %v262_v60 = vpop.f32.mrf.mxu0 }
  0xc7   :  { %v471_v61 = vpop.f32.mrf.mxu1  ;;  %v626_v1 = vadd.f32 %v1346_v59, %v262_v60  ;;  %v1390_v60 = vunpack.c.h.bf16 %v1410_v45 }
  0xc8   :  { %v795_v62 = vadd.f32 %v1378_v56, %v471_v61 }
  0xc9   :  { %v646_v6 = vadd.f32 %v1689_v8, %v626_v1 }
  0xca   :  { %v815_v0 = vadd.f32 %v1684_v3, %v795_v62 }
  0xcb   :  { %v662_v7 = vmax.f32 %v646_v6, 0.0 }
  0xcc   :  { %v831_v4 = vmax.f32 %v815_v0, 0.0 }
  0xcd   :  { %724 = vmatmul.f32.gmra.mxu2 %v662_v7  ;;  %v1404_v7 = vld [vmem:[%s1891_s2 + $0x30] sm:$0xff]  }
  0xce   :  { %893 = vmatmul.f32.gmra.mxu3 %v831_v4  ;;  %v265_v10 = vpop.f32.mrf.mxu0  ;;  %v1411_v4 = vld [vmem:[%s1892_s3 + $0x30] sm:$0xff]   ;;  %v1362_v23 = vunpack.c.h.bf16 %v1404_v7 }
  0xcf   :  { %v474_v11 = vpop.f32.mrf.mxu1  ;;  %v627_v14 = vadd.f32 %v1349_v9, %v265_v10  ;;  %v1393_v10 = vunpack.c.l.bf16 %v1411_v4 }
  0xd0   :  { %v796_v12 = vadd.f32 %v1381_v5, %v474_v11 }
  0xd1   :  { %v647_v17 = vadd.f32 %v1689_v8, %v627_v14 }
  0xd2   :  { %v816_v13 = vadd.f32 %v1684_v3, %v796_v12 }
  0xd3   :  { %v663_v18 = vmax.f32 %v647_v17, 0.0 }
  0xd4   :  { %v832_v15 = vmax.f32 %v816_v13, 0.0  ;;  %v1361_v13 = vunpack.c.l.bf16 %v1404_v7 }
  0xd5   :  { %727 = vmatmul.f32.gmra.mxu2 %v663_v18 }
  0xd6   :  { %896 = vmatmul.f32.gmra.mxu3 %v832_v15  ;;  %v267_v20 = vpop.f32.mrf.mxu0 }
  0xd7   :  { %v476_v21 = vpop.f32.mrf.mxu1  ;;  %v628_v25 = vadd.f32 %v1350_v19, %v267_v20  ;;  %v1394_v20 = vunpack.c.h.bf16 %v1411_v4 }
  0xd8   :  { %v797_v22 = vadd.f32 %v1382_v16, %v476_v21 }
  0xd9   :  { %v648_v29 = vadd.f32 %v1689_v8, %v628_v25 }
  0xda   :  { %v817_v24 = vadd.f32 %v1684_v3, %v797_v22 }
  0xdb   :  { %v664_v30 = vmax.f32 %v648_v29, 0.0 }
  0xdc   :  { %v833_v27 = vmax.f32 %v817_v24, 0.0 }
  0xdd   :  { %730 = vmatmul.f32.gmra.mxu2 %v664_v30  ;;  %v1405_v30 = vld [vmem:[%s1891_s2 + $0x38] sm:$0xff]  }
  0xde   :  { %899 = vmatmul.f32.gmra.mxu3 %v833_v27  ;;  %v270_v32 = vpop.f32.mrf.mxu0  ;;  %v1412_v27 = vld [vmem:[%s1892_s3 + $0x38] sm:$0xff]   ;;  %v1366_v45 = vunpack.c.h.bf16 %v1405_v30 }
  0xdf   :  { %v479_v33 = vpop.f32.mrf.mxu1  ;;  %v629_v36 = vadd.f32 %v1353_v31, %v270_v32  ;;  %v1397_v32 = vunpack.c.l.bf16 %v1412_v27 }
  0xe0   :  { %v798_v34 = vadd.f32 %v1385_v28, %v479_v33 }
  0xe1   :  { %v649_v39 = vadd.f32 %v1689_v8, %v629_v36 }
  0xe2   :  { %v818_v35 = vadd.f32 %v1684_v3, %v798_v34 }
  0xe3   :  { %v665_v40 = vmax.f32 %v649_v39, 0.0 }
  0xe4   :  { %v834_v37 = vmax.f32 %v818_v35, 0.0  ;;  %v1365_v35 = vunpack.c.l.bf16 %v1405_v30 }
  0xe5   :  { %733 = vmatmul.f32.gmra.mxu2 %v665_v40 }
  0xe6   :  { %902 = vmatmul.f32.gmra.mxu3 %v834_v37  ;;  %v272_v42 = vpop.f32.mrf.mxu0 }
  0xe7   :  { %v481_v43 = vpop.f32.mrf.mxu1  ;;  %v630_v47 = vadd.f32 %v1354_v41, %v272_v42  ;;  %v1398_v42 = vunpack.c.h.bf16 %v1412_v27 }
  0xe8   :  { %v799_v44 = vadd.f32 %v1386_v38, %v481_v43 }
  0xe9   :  { %v650_v51 = vadd.f32 %v1689_v8, %v630_v47 }
  0xea   :  { %v819_v46 = vadd.f32 %v1684_v3, %v799_v44 }
  0xeb   :  { %v666_v52 = vmax.f32 %v650_v51, 0.0 }
  0xec   :  { %v835_v49 = vmax.f32 %v819_v46, 0.0 }
  0xed   :  { %736 = vmatmul.f32.gmra.mxu2 %v666_v52 }
  0xee   :  { %905 = vmatmul.f32.gmra.mxu3 %v835_v49  ;;  %v275_v54 = vpop.f32.mrf.mxu0 }
  0xef   :  { %v484_v55 = vpop.f32.mrf.mxu1  ;;  %v631_v58 = vadd.f32 %v1357_v53, %v275_v54  ;;  %v1768_v54 = vld [vmem:[%s1899_s9] ss:$0 sm:$0xff] }
  0xf0   :  { %v800_v56 = vadd.f32 %v1389_v50, %v484_v55  ;;  %v1773_v55 = vld [vmem:[%s1900_s6] ss:$0 sm:$0xff] }
  0xf1   :  { %v651_v61 = vadd.f32 %v1689_v8, %v631_v58 }
  0xf2   :  { %v820_v57 = vadd.f32 %v1684_v3, %v800_v56 }
  0xf3   :  { %v667_v62 = vmax.f32 %v651_v61, 0.0 }
  0xf4   :  { %v836_v59 = vmax.f32 %v820_v57, 0.0 }
  0xf5   :  { %739 = vmatmul.f32.gmra.mxu2 %v667_v62 }
  0xf6   :  { %908 = vmatmul.f32.gmra.mxu3 %v836_v59  ;;  %v277_v0 = vpop.f32.mrf.mxu0 }
  0xf7   :  { %v486_v1 = vpop.f32.mrf.mxu1  ;;  %v632_v6 = vadd.f32 %v1358_v63, %v277_v0 }
  0xf8   :  { %v801_v2 = vadd.f32 %v1390_v60, %v486_v1 }
  0xf9   :  { %v652_v11 = vadd.f32 %v1689_v8, %v632_v6 }
  0xfa   :  { %v821_v5 = vadd.f32 %v1684_v3, %v801_v2 }
  0xfb   :  { %v668_v12 = vmax.f32 %v652_v11, 0.0 }
  0xfc   :  { %v837_v9 = vmax.f32 %v821_v5, 0.0 }
  0xfd   :  { %742 = vmatmul.f32.gmra.mxu2 %v668_v12 }
  0xfe   :  { %911 = vmatmul.f32.gmra.mxu3 %v837_v9  ;;  %v280_v14 = vpop.f32.mrf.mxu0 }
  0xff   :  { %v489_v15 = vpop.f32.mrf.mxu1  ;;  %v633_v18 = vadd.f32 %v1361_v13, %v280_v14 }
 0x100   :  { %v802_v16 = vadd.f32 %v1393_v10, %v489_v15 }
 0x101   :  { %v653_v21 = vadd.f32 %v1689_v8, %v633_v18 }
 0x102   :  { %v822_v17 = vadd.f32 %v1684_v3, %v802_v16 }
 0x103   :  { %v669_v22 = vmax.f32 %v653_v21, 0.0 }
 0x104   :  { %v838_v19 = vmax.f32 %v822_v17, 0.0 }
 0x105   :  { %745 = vmatmul.f32.gmra.mxu2 %v669_v22 }
 0x106   :  { %914 = vmatmul.f32.gmra.mxu3 %v838_v19  ;;  %v282_v24 = vpop.f32.mrf.mxu0 }
 0x107   :  { %v491_v25 = vpop.f32.mrf.mxu1  ;;  %v634_v29 = vadd.f32 %v1362_v23, %v282_v24 }
 0x108   :  { %v803_v26 = vadd.f32 %v1394_v20, %v491_v25 }
 0x109   :  { %v654_v33 = vadd.f32 %v1689_v8, %v634_v29 }
 0x10a   :  { %v823_v28 = vadd.f32 %v1684_v3, %v803_v26 }
 0x10b   :  { %v670_v34 = vmax.f32 %v654_v33, 0.0 }
 0x10c   :  { %v839_v31 = vmax.f32 %v823_v28, 0.0 }
 0x10d   :  { %748 = vmatmul.f32.gmra.mxu2 %v670_v34 }
 0x10e   :  { %917 = vmatmul.f32.gmra.mxu3 %v839_v31  ;;  %v285_v36 = vpop.f32.mrf.mxu0 }
 0x10f   :  { %v494_v37 = vpop.f32.mrf.mxu1  ;;  %v635_v40 = vadd.f32 %v1365_v35, %v285_v36 }
 0x110   :  { %v804_v38 = vadd.f32 %v1397_v32, %v494_v37 }
 0x111   :  { %v655_v43 = vadd.f32 %v1689_v8, %v635_v40 }
 0x112   :  { %v824_v39 = vadd.f32 %v1684_v3, %v804_v38 }
 0x113   :  { %v671_v44 = vmax.f32 %v655_v43, 0.0 }
 0x114   :  { %v840_v41 = vmax.f32 %v824_v39, 0.0 }
 0x115   :  { %751 = vmatmul.f32.gmra.mxu2 %v671_v44 }
 0x116   :  { %920 = vmatmul.f32.gmra.mxu3 %v840_v41  ;;  %v287_v46 = vpop.f32.mrf.mxu0 }
 0x117   :  { %v496_v47 = vpop.f32.mrf.mxu1  ;;  %v636_v50 = vadd.f32 %v1366_v45, %v287_v46 }
 0x118   :  { %v805_v48 = vadd.f32 %v1398_v42, %v496_v47 }
 0x119   :  { %v656_v52 = vadd.f32 %v1689_v8, %v636_v50 }
 0x11a   :  { %v825_v49 = vadd.f32 %v1684_v3, %v805_v48 }
 0x11b   :  { %v672_v53 = vmax.f32 %v656_v52, 0.0 }
 0x11c   :  { %v841_v51 = vmax.f32 %v825_v49, 0.0 }
 0x11d   :  { %754 = vmatmul.f32.gmra.mxu2 %v672_v53 }
 0x11e   :  { %923 = vmatmul.f32.gmra.mxu3 %v841_v51 }
 0x128   :  { %v710_v57 = vpop.f32.mrf.mxu2 }
 0x129   :  { %v879_v56 = vpop.f32.mrf.mxu3  ;;  %v711_v8 = vadd.f32 %v1773_v55, %v710_v57 }
 0x12a   :  { %v880_v3 = vadd.f32 %v1768_v54, %v879_v56 }
 0x12b   :  { %v758_v59 = vmax.f32 %v711_v8, 0.0 }
 0x12c   :  { %v927_v58 = vmax.f32 %v880_v3, 0.0 }
 0x12e   :  { %v943_v60 = vadd.f32 %v927_v58, %v758_v59 }
 0x130   :  { %v959_v62 = vmul.f32 0.5, %v943_v60  ;;  %v713_v0 = vpop.f32.mrf.mxu2 }
 0x131   :  { %v882_v61 = vpop.f32.mrf.mxu3  ;;  %v714_v1 = vadd.f32 %v1773_v55, %v713_v0 }
 0x132   :  { %v883_v63 = vadd.f32 %v1768_v54, %v882_v61  ;;  %1073 = vst [vmem:[%s1901_s10] sm:$0xff] %v959_v62  ;;  %v1091_v14 = vmul.f32 %v959_v62, %v959_v62 }
 0x133   :  { %v759_v4 = vmax.f32 %v714_v1, 0.0 }
 0x134   :  { %v928_v2 = vmax.f32 %v883_v63, 0.0 }
 0x136   :  { %v944_v5 = vadd.f32 %v928_v2, %v759_v4 }
 0x138   :  { %v960_v7 = vmul.f32 0.5, %v944_v5  ;;  %v716_v10 = vpop.f32.mrf.mxu2 }
 0x139   :  { %v885_v6 = vpop.f32.mrf.mxu3  ;;  %v717_v13 = vadd.f32 %v1773_v55, %v716_v10 }
 0x13a   :  { %v886_v9 = vadd.f32 %v1768_v54, %v885_v6  ;;  %v1058_v11 = vmul.f32 0.0, %v960_v7 }
 0x13b   :  { %v760_v17 = vmax.f32 %v717_v13, 0.0 }
 0x13c   :  { %v929_v12 = vmax.f32 %v886_v9, 0.0  ;;  %1074 = vst [vmem:[%s1901_s10 + $0x8] sm:$0xff] %v1058_v11  ;;  %v1094_v15 = vadd.f32 %v1058_v11, %v959_v62  ;;  %v1095_v16 = vmul.f32 %v1058_v11, %v1058_v11 }
 0x13e   :  { %v1096_v18 = vadd.f32 %v1095_v16, %v1091_v14  ;;  %v945_v19 = vadd.f32 %v929_v12, %v760_v17 }
 0x140   :  { %v961_v21 = vmul.f32 0.5, %v945_v19  ;;  %v719_v23 = vpop.f32.mrf.mxu2 }
 0x141   :  { %v888_v20 = vpop.f32.mrf.mxu3  ;;  %v720_v25 = vadd.f32 %v1773_v55, %v719_v23 }
 0x142   :  { %v889_v22 = vadd.f32 %v1768_v54, %v888_v20  ;;  %v1059_v24 = vmul.f32 0.0, %v961_v21 }
 0x143   :  { %v761_v29 = vmax.f32 %v720_v25, 0.0 }
 0x144   :  { %1075 = vst [vmem:[%s1901_s10 + $0x10] sm:$0xff] %v1059_v24  ;;  %v1098_v26 = vadd.f32 %v1094_v15, %v1059_v24  ;;  %v1099_v27 = vmul.f32 %v1059_v24, %v1059_v24  ;;  %v930_v28 = vmax.f32 %v889_v22, 0.0 }
 0x146   :  { %v1100_v30 = vadd.f32 %v1099_v27, %v1096_v18  ;;  %v946_v31 = vadd.f32 %v930_v28, %v761_v29 }
 0x148   :  { %v962_v33 = vmul.f32 0.5, %v946_v31  ;;  %v722_v35 = vpop.f32.mrf.mxu2 }
 0x149   :  { %v891_v32 = vpop.f32.mrf.mxu3  ;;  %v723_v38 = vadd.f32 %v1773_v55, %v722_v35 }
 0x14a   :  { %v892_v34 = vadd.f32 %v1768_v54, %v891_v32  ;;  %v1060_v36 = vmul.f32 0.0, %v962_v33 }
 0x14b   :  { %v762_v41 = vmax.f32 %v723_v38, 0.0 }
 0x14c   :  { %v931_v37 = vmax.f32 %v892_v34, 0.0  ;;  %1076 = vst [vmem:[%s1901_s10 + $0x18] sm:$0xff] %v1060_v36  ;;  %v1102_v39 = vadd.f32 %v1098_v26, %v1060_v36  ;;  %v1103_v40 = vmul.f32 %v1060_v36, %v1060_v36 }
 0x14e   :  { %v1104_v42 = vadd.f32 %v1103_v40, %v1100_v30  ;;  %v947_v43 = vadd.f32 %v931_v37, %v762_v41 }
 0x150   :  { %v963_v45 = vmul.f32 0.5, %v947_v43  ;;  %v725_v47 = vpop.f32.mrf.mxu2 }
 0x151   :  { %v894_v44 = vpop.f32.mrf.mxu3  ;;  %v726_v49 = vadd.f32 %v1773_v55, %v725_v47 }
 0x152   :  { %v895_v46 = vadd.f32 %v1768_v54, %v894_v44  ;;  %v1061_v48 = vmul.f32 0.0, %v963_v45 }
 0x153   :  { %v763_v53 = vmax.f32 %v726_v49, 0.0 }
 0x154   :  { %1077 = vst [vmem:[%s1901_s10 + $0x20] sm:$0xff] %v1061_v48  ;;  %v1802_v50 = vadd.f32 %v1102_v39, %v1061_v48  ;;  %v1107_v51 = vmul.f32 %v1061_v48, %v1061_v48  ;;  %v932_v52 = vmax.f32 %v895_v46, 0.0 }
 0x156   :  { %v1804_v56 = vadd.f32 %v1107_v51, %v1104_v42  ;;  %v948_v3 = vadd.f32 %v932_v52, %v763_v53 }
 0x158   :  { %v964_v58 = vmul.f32 0.5, %v948_v3  ;;  %v728_v59 = vpop.f32.mrf.mxu2 }
 0x159   :  { %v897_v57 = vpop.f32.mrf.mxu3  ;;  %v729_v62 = vadd.f32 %v1773_v55, %v728_v59 }
 0x15a   :  { %v898_v8 = vadd.f32 %v1768_v54, %v897_v57  ;;  %v1807_v60 = vmul.f32 0.0, %v964_v58 }
 0x15b   :  { %v764_v63 = vmax.f32 %v729_v62, 0.0 }
 0x15c   :  { %v933_v61 = vmax.f32 %v898_v8, 0.0  ;;  %1078 = vst [vmem:[%s1901_s10 + $0x28] sm:$0xff] %v1807_v60 }
 0x15e   :  { %v949_v0 = vadd.f32 %v933_v61, %v764_v63 }
 0x160   :  { %v965_v2 = vmul.f32 0.5, %v949_v0  ;;  %v731_v5 = vpop.f32.mrf.mxu2 }
 0x161   :  { %v900_v1 = vpop.f32.mrf.mxu3  ;;  %v732_v7 = vadd.f32 %v1773_v55, %v731_v5  ;;  %v1111_v5 = vmul.f32 %v1807_v60, %v1807_v60 }
 0x162   :  { %v901_v4 = vadd.f32 %v1768_v54, %v900_v1  ;;  %v1815_v6 = vmul.f32 0.0, %v965_v2 }
 0x163   :  { %v765_v10 = vmax.f32 %v732_v7, 0.0 }
 0x164   :  { %1079 = vst [vmem:[%s1901_s10 + $0x30] sm:$0xff] %v1815_v6  ;;  %v934_v9 = vmax.f32 %v901_v4, 0.0 }
 0x166   :  { %v950_v11 = vadd.f32 %v934_v9, %v765_v10  ;;  %v1115_v9 = vmul.f32 %v1815_v6, %v1815_v6 }
 0x168   :  { %v966_v13 = vmul.f32 0.5, %v950_v11  ;;  %v734_v15 = vpop.f32.mrf.mxu2  ;;  %v1110_v11 = vadd.f32 %v1802_v50, %v1807_v60 }
 0x169   :  { %v903_v12 = vpop.f32.mrf.mxu3  ;;  %v735_v18 = vadd.f32 %v1773_v55, %v734_v15 }
 0x16a   :  { %v904_v14 = vadd.f32 %v1768_v54, %v903_v12  ;;  %v1823_v16 = vmul.f32 0.0, %v966_v13 }
 0x16b   :  { %v766_v19 = vmax.f32 %v735_v18, 0.0  ;;  %v1114_v18 = vadd.f32 %v1110_v11, %v1815_v6 }
 0x16c   :  { %v935_v17 = vmax.f32 %v904_v14, 0.0  ;;  %1080 = vst [vmem:[%s1901_s10 + $0x38] sm:$0xff] %v1823_v16  ;;  %v1112_v14 = vadd.f32 %v1111_v5, %v1804_v56  ;;  %v1119_v15 = vmul.f32 %v1823_v16, %v1823_v16 }
 0x16d   :  { %v1118_v50 = vadd.f32 %v1114_v18, %v1823_v16 }
 0x16e   :  { %v951_v20 = vadd.f32 %v935_v17, %v766_v19 }
 0x170   :  { %v967_v22 = vmul.f32 0.5, %v951_v20  ;;  %v737_v24 = vpop.f32.mrf.mxu2 }
 0x171   :  { %v906_v21 = vpop.f32.mrf.mxu3  ;;  %v738_v26 = vadd.f32 %v1773_v55, %v737_v24 }
 0x172   :  { %v907_v23 = vadd.f32 %v1768_v54, %v906_v21  ;;  %v1831_v25 = vmul.f32 0.0, %v967_v22  ;;  %v1116_v22 = vadd.f32 %v1115_v9, %v1112_v14 }
 0x173   :  { %v767_v28 = vmax.f32 %v738_v26, 0.0 }
 0x174   :  { %1081 = vst [vmem:[%s1901_s10 + $0x40] sm:$0xff] %v1831_v25  ;;  %v936_v27 = vmax.f32 %v907_v23, 0.0  ;;  %v1123_v23 = vmul.f32 %v1831_v25, %v1831_v25  ;;  %v1120_v60 = vadd.f32 %v1119_v15, %v1116_v22  ;;  %v1122_v26 = vadd.f32 %v1118_v50, %v1831_v25 }
 0x176   :  { %v952_v29 = vadd.f32 %v936_v27, %v767_v28  ;;  %v1124_v27 = vadd.f32 %v1123_v23, %v1120_v60 }
 0x178   :  { %v968_v31 = vmul.f32 0.5, %v952_v29  ;;  %v740_v33 = vpop.f32.mrf.mxu2 }
 0x179   :  { %v909_v30 = vpop.f32.mrf.mxu3  ;;  %v741_v36 = vadd.f32 %v1773_v55, %v740_v33 }
 0x17a   :  { %v910_v32 = vadd.f32 %v1768_v54, %v909_v30  ;;  %v1066_v34 = vmul.f32 0.0, %v968_v31 }
 0x17b   :  { %v768_v37 = vmax.f32 %v741_v36, 0.0 }
 0x17c   :  { %v937_v35 = vmax.f32 %v910_v32, 0.0  ;;  %1082 = vst [vmem:[%s1901_s10 + $0x48] sm:$0xff] %v1066_v34  ;;  %v1127_v24 = vmul.f32 %v1066_v34, %v1066_v34  ;;  %v1126_v30 = vadd.f32 %v1122_v26, %v1066_v34 }
 0x17e   :  { %v953_v38 = vadd.f32 %v937_v35, %v768_v37  ;;  %v1128_v33 = vadd.f32 %v1127_v24, %v1124_v27 }
 0x180   :  { %v969_v40 = vmul.f32 0.5, %v953_v38  ;;  %v743_v42 = vpop.f32.mrf.mxu2 }
 0x181   :  { %v912_v39 = vpop.f32.mrf.mxu3  ;;  %v744_v44 = vadd.f32 %v1773_v55, %v743_v42 }
 0x182   :  { %v913_v41 = vadd.f32 %v1768_v54, %v912_v39  ;;  %v1067_v43 = vmul.f32 0.0, %v969_v40 }
 0x183   :  { %v769_v46 = vmax.f32 %v744_v44, 0.0 }
 0x184   :  { %1083 = vst [vmem:[%s1901_s10 + $0x50] sm:$0xff] %v1067_v43  ;;  %v938_v45 = vmax.f32 %v913_v41, 0.0  ;;  %v1131_v28 = vmul.f32 %v1067_v43, %v1067_v43  ;;  %v1130_v16 = vadd.f32 %v1126_v30, %v1067_v43 }
 0x186   :  { %v954_v47 = vadd.f32 %v938_v45, %v769_v46  ;;  %v1132_v39 = vadd.f32 %v1131_v28, %v1128_v33 }
 0x188   :  { %v970_v49 = vmul.f32 0.5, %v954_v47  ;;  %v746_v52 = vpop.f32.mrf.mxu2 }
 0x189   :  { %v915_v48 = vpop.f32.mrf.mxu3  ;;  %v747_v57 = vadd.f32 %v1773_v55, %v746_v52 }
 0x18a   :  { %v916_v51 = vadd.f32 %v1768_v54, %v915_v48  ;;  %v1068_v53 = vmul.f32 0.0, %v970_v49 }
 0x18b   :  { %v770_v58 = vmax.f32 %v747_v57, 0.0 }
 0x18c   :  { %v939_v3 = vmax.f32 %v916_v51, 0.0  ;;  %1084 = vst [vmem:[%s1901_s10 + $0x58] sm:$0xff] %v1068_v53  ;;  %v1135_v36 = vmul.f32 %v1068_v53, %v1068_v53  ;;  %v1134_v40 = vadd.f32 %v1130_v16, %v1068_v53 }
 0x18e   :  { %v955_v8 = vadd.f32 %v939_v3, %v770_v58  ;;  %v1136_v34 = vadd.f32 %v1135_v36, %v1132_v39 }
 0x190   :  { %v971_v61 = vmul.f32 0.5, %v955_v8  ;;  %v749_v63 = vpop.f32.mrf.mxu2 }
 0x191   :  { %v918_v59 = vpop.f32.mrf.mxu3  ;;  %v750_v1 = vadd.f32 %v1773_v55, %v749_v63 }
 0x192   :  { %v919_v62 = vadd.f32 %v1768_v54, %v918_v59  ;;  %v1069_v0 = vmul.f32 0.0, %v971_v61 }
 0x193   :  { %v771_v4 = vmax.f32 %v750_v1, 0.0 }
 0x194   :  { %1085 = vst [vmem:[%s1901_s10 + $0x60] sm:$0xff] %v1069_v0  ;;  %v940_v2 = vmax.f32 %v919_v62, 0.0  ;;  %v1139_v41 = vmul.f32 %v1069_v0, %v1069_v0  ;;  %v1138_v44 = vadd.f32 %v1134_v40, %v1069_v0 }
 0x196   :  { %v956_v7 = vadd.f32 %v940_v2, %v771_v4  ;;  %v1140_v46 = vadd.f32 %v1139_v41, %v1136_v34 }
 0x198   :  { %v972_v12 = vmul.f32 0.5, %v956_v7  ;;  %v752_v17 = vpop.f32.mrf.mxu2 }
 0x199   :  { %v921_v10 = vpop.f32.mrf.mxu3  ;;  %v753_v21 = vadd.f32 %v1773_v55, %v752_v17 }
 0x19a   :  { %v922_v13 = vadd.f32 %v1768_v54, %v921_v10  ;;  %v1070_v19 = vmul.f32 0.0, %v972_v12 }
 0x19b   :  { %v772_v56 = vmax.f32 %v753_v21, 0.0 }
 0x19c   :  { %v941_v20 = vmax.f32 %v922_v13, 0.0  ;;  %1086 = vst [vmem:[%s1901_s10 + $0x68] sm:$0xff] %v1070_v19  ;;  %v1143_v45 = vmul.f32 %v1070_v19, %v1070_v19  ;;  %v1142_v47 = vadd.f32 %v1138_v44, %v1070_v19 }
 0x19e   :  { %v957_v6 = vadd.f32 %v941_v20, %v772_v56  ;;  %v1144_v49 = vadd.f32 %v1143_v45, %v1140_v46 }
 0x1a0   :  { %v973_v31 = vmul.f32 0.5, %v957_v6  ;;  %v755_v35 = vpop.f32.mrf.mxu2 }
 0x1a1   :  { %v924_v29 = vpop.f32.mrf.mxu3  ;;  %v756_v38 = vadd.f32 %v1773_v55, %v755_v35 }
 0x1a2   :  { %v925_v32 = vadd.f32 %v1768_v54, %v924_v29  ;;  %v1071_v37 = vmul.f32 0.0, %v973_v31 }
 0x1a3   :  { %v773_v42 = vmax.f32 %v756_v38, 0.0 }
 0x1a4   :  { %1087 = vst [vmem:[%s1901_s10 + $0x70] sm:$0xff] %v1071_v37  ;;  %v942_v25 = vmax.f32 %v925_v32, 0.0  ;;  %v1147_v43 = vmul.f32 %v1071_v37, %v1071_v37  ;;  %v1146_v51 = vadd.f32 %v1142_v47, %v1071_v37 }
 0x1a6   :  { %v958_v54 = vadd.f32 %v942_v25, %v773_v42  ;;  %v1148_v52 = vadd.f32 %v1147_v43, %v1144_v49 }
 0x1a8   :  { %v974_v48 = vmul.f32 0.5, %v958_v54 }
 0x1aa   :  { %v1072_v55 = vmul.f32 0.0, %v974_v48 }
 0x1ac   :  { %1088 = vst [vmem:[%s1901_s10 + $0x78] sm:$0xff] %v1072_v55  ;;  %v1150_v53 = vadd.f32 %v1146_v51, %v1072_v55  ;;  %v1151_v3 = vmul.f32 %v1072_v55, %v1072_v55 }
 0x1ae   :  { %v1152_v57 = vadd.f32 %v1151_v3, %v1148_v52  ;;  %1153 = vst [vmem:[%s1902_s11] sm:$0xff] %v1150_v53 }
 0x1b0   :  { %1154 = vst [vmem:[%s1903_s12] sm:$0xff] %v1152_v57 }

</bundles_post_ra>
